<compile_context>
chip_gen: v6e
topology: v6e:2x2x1
jax: 0.10.0
libtpu: 0.0.40
codegen_flags: <defaults>
</compile_context>

<pallas_src>
import numpy as np
import jax
import jax.numpy as jnp
from jax.experimental import pallas as pl
from jax.experimental.pallas import tpu as pltpu

C_PAD = 128                       # channel padding -> lane-dense (multiple of 128)
_VMEM_LIMIT = 32 * 1024 * 1024    # explicit scoped-VMEM budget, safe on v5e/v6e/v7x


# ----------------------------------------------------------------------------
# Kernel 1: dual-network pointwise conv (1x1) + bias + ReLU.
#   grid = (2, M//tm): axis 0 = {teacher, student} (parallel -> both v7x TCs),
#   axis 1 = row tiles.  f32 in HBM, bf16 fed to the MXU, f32 accumulate.
# ----------------------------------------------------------------------------
def _pw_conv_relu_kernel(x_ref, w_ref, b_ref, o_ref):
    x = x_ref[0]                              # (tm, C)  f32
    w = w_ref[0]                              # (C, C)   f32
    y = jnp.dot(x.astype(jnp.bfloat16), w.astype(jnp.bfloat16),
                preferred_element_type=jnp.float32)
    y = y + b_ref[0]                          # (1, C) broadcast over rows
    o_ref[0] = jnp.maximum(y, 0.0).astype(o_ref.dtype)


def pw_conv_relu_dual(x, w, b):
    """x: (2, M, C), w: (2, C, C), b: (2, 1, C) -> (2, M, C) float32."""
    n_nets, M, C = x.shape
    Cout = w.shape[2]
    # Whole-M blocks at toy sizes; 512-1024 row tiles once M gets realistic.
    if M <= 1024:
        tm = M
    else:
        tm = next((t for t in (1024, 512, 256, 128, 8) if M % t == 0), M)
    grid = (n_nets, M // tm)
    return pl.pallas_call(
        _pw_conv_relu_kernel,
        out_shape=jax.ShapeDtypeStruct((n_nets, M, Cout), jnp.float32),
        grid_spec=pltpu.PrefetchScalarGridSpec(
            num_scalar_prefetch=0,
            grid=grid,
            in_specs=[
                pl.BlockSpec((1, tm, C), lambda n, i: (n, i, 0)),
                pl.BlockSpec((1, C, Cout), lambda n, i: (n, 0, 0)),
                pl.BlockSpec((1, 1, Cout), lambda n, i: (n, 0, 0)),
            ],
            out_specs=pl.BlockSpec((1, tm, Cout), lambda n, i: (n, i, 0)),
        ),
        compiler_params=pltpu.CompilerParams(
            dimension_semantics=("parallel", "parallel"),
            vmem_limit_bytes=_VMEM_LIMIT,
        ),
    )(x, w, b)


# ----------------------------------------------------------------------------
# Kernel 2: fused anomaly map.
#   grid = (B,).  For each batch element, loop (unrolled) over layers:
#     - channel-L2 normalize teacher/student (rsqrt on EUP, eps=1e-12 clamp),
#     - layer map m = 0.5*||t_n - s_n||^2 via the exact cosine identity,
#     - bilinear upsample = one (1, S_l) @ (S_l, H*W) matmul,
#     - running product of the upsampled layer maps (kept live, no HBM stack).
# ----------------------------------------------------------------------------
def _anomaly_map_kernel(*refs):
    """refs = (t_0, s_0, k_0, t_1, s_1, k_1, ..., out_ref)."""
    o_ref = refs[-1]                           # block (1, 1, H*W)
    n_layers = (len(refs) - 1) // 3
    acc = None
    for l in range(n_layers):
        t = refs[3 * l][0]                     # (S_l, C) f32; padded channels are 0
        s = refs[3 * l + 1][0]
        k = refs[3 * l + 2][...]               # (S_l, H*W) f32
        sum_tt = jnp.sum(t * t, axis=-1)       # (S_l,)
        sum_ss = jnp.sum(s * s, axis=-1)
        sum_ts = jnp.sum(t * s, axis=-1)
        # F.normalize(eps=1e-12): 1/max(||x||, eps) == rsqrt(max(||x||^2, eps^2)).
        inv_t = jax.lax.rsqrt(jnp.maximum(sum_tt, 1e-24))
        inv_s = jax.lax.rsqrt(jnp.maximum(sum_ss, 1e-24))
        # 0.5*||t_n - s_n||^2 = 0.5*(||t_n||^2 + ||s_n||^2) - <t_n, s_n>
        m = (0.5 * (sum_tt * inv_t * inv_t + sum_ss * inv_s * inv_s)
             - sum_ts * (inv_t * inv_s))                              # (S_l,)
        up = jnp.dot(m[None, :].astype(jnp.bfloat16),
                     k.astype(jnp.bfloat16),
                     preferred_element_type=jnp.float32)              # (1, H*W)
        acc = up if acc is None else acc * up
    o_ref[0] = acc.astype(o_ref.dtype)


def anomaly_map_fused(teacher_feats, student_feats, layer_names, upsample_mats,
                      image_size):
    """teacher/student feats: dict[name -> (B, h, w, C_PAD)] -> (B, 1, H, W)."""
    H, W = image_size
    hw = H * W
    B = teacher_feats[layer_names[0]].shape[0]
    inputs, in_specs = [], []
    for name in layer_names:
        t = teacher_feats[name]
        s = student_feats[name]
        _, h, w, c = t.shape
        S = h * w
        inputs += [t.reshape(B, S, c), s.reshape(B, S, c), upsample_mats[name]]
        in_specs += [
            pl.BlockSpec((1, S, c), lambda b: (b, 0, 0)),
            pl.BlockSpec((1, S, c), lambda b: (b, 0, 0)),
            pl.BlockSpec((S, hw), lambda b: (0, 0)),
        ]
    out = pl.pallas_call(
        _anomaly_map_kernel,
        out_shape=jax.ShapeDtypeStruct((B, 1, hw), jnp.float32),
        grid_spec=pltpu.PrefetchScalarGridSpec(
            num_scalar_prefetch=0,
            grid=(B,),
            in_specs=in_specs,
            out_specs=pl.BlockSpec((1, 1, hw), lambda b: (b, 0, 0)),
        ),
        compiler_params=pltpu.CompilerParams(
            dimension_semantics=("parallel",),
            vmem_limit_bytes=_VMEM_LIMIT,
        ),
    )(*inputs)
    return out.reshape(B, 1, H, W)


# ----------------------------------------------------------------------------
# Host-side helpers (numpy / jnp glue, all small & XLA-fusable under jit).
# ----------------------------------------------------------------------------
def _bilinear_matrix(out_size, in_size):
    """Interp matrix matching F.interpolate(mode='bilinear', align_corners=False)."""
    m = np.zeros((out_size, in_size), dtype=np.float32)
    if in_size == 1:
        m[:, 0] = 1.0
        return m
    scale = in_size / out_size
    for i in range(out_size):
        src = max((i + 0.5) * scale - 0.5, 0.0)
        i0 = min(int(np.floor(src)), in_size - 1)
        i1 = min(i0 + 1, in_size - 1)
        frac = src - i0
        m[i, i0] += 1.0 - frac
        m[i, i1] += frac
    return m


def _init_extractor_params(key, in_channels, layer_channels, layer_names):
    """Synthetic resnet18 stand-in: per layer a 1x1 conv (Cin, Cout) + bias."""
    params = {}
    cin = in_channels
    for name, cout in zip(layer_names, layer_channels):
        key, k1, k2 = jax.random.split(key, 3)
        w = jax.random.normal(k1, (cin, cout), jnp.float32) * (1.0 / np.sqrt(cin))
        b = jax.random.normal(k2, (1, cout), jnp.float32) * 0.1
        params[name] = (w, b)
        cin = cout
    return params


def _pad_weight(w, c_pad):
    cin, cout = w.shape
    return jnp.zeros((c_pad, c_pad), jnp.float32).at[:cin, :cout].set(w)


def _pad_bias(b, c_pad):
    return jnp.zeros((1, c_pad), jnp.float32).at[:, : b.shape[1]].set(b)


def _avg_pool2_nhwc(x):
    """2x2 stride-2 average pool, channels-last (B, H, W, C)."""
    B, H, W, C = x.shape
    return x.reshape(B, H // 2, 2, W // 2, 2, C).mean(axis=(2, 4))


# ----------------------------------------------------------------------------
# Model
# ----------------------------------------------------------------------------
class STFPMModelPallas:
    """Pallas implementation of STFPMModel.forward.

    Teacher weights are a deterministic "pretrained" init (seed 1); student
    weights a different deterministic init (seed 2).  tiler is None.  The
    backbone is a synthetic avg-pool + 1x1-conv feature pyramid stand-in for
    resnet18 (channel counts [8, 16, 32]).
    """

    def __init__(self, layers, input_size, in_channels=4):
        self.layers = list(layers)
        self.image_size = tuple(input_size)
        self.layer_channels = [8, 16, 32][: len(self.layers)]

        t_params = _init_extractor_params(
            jax.random.PRNGKey(1), in_channels, self.layer_channels, self.layers)
        s_params = _init_extractor_params(
            jax.random.PRNGKey(2), in_channels, self.layer_channels, self.layers)

        # Zero-pad weights/biases to C_PAD lanes and stack teacher/student so a
        # single pallas_call per layer serves both networks.  Padded output
        # channels remain exactly 0 through ReLU -> inert downstream.
        self.stacked_params = {}
        for name in self.layers:
            wt, bt = t_params[name]
            ws, bs = s_params[name]
            self.stacked_params[name] = (
                jnp.stack([_pad_weight(wt, C_PAD), _pad_weight(ws, C_PAD)]),
                jnp.stack([_pad_bias(bt, C_PAD), _pad_bias(bs, C_PAD)]),
            )

        # Per-layer combined bilinear upsample matrix K^T = kron(U_h, U_w)^T,
        # shape (h*w, H*W): upsample becomes one lane-dense matmul in-kernel.
        H, W = self.image_size
        self.upsample_mats = {}
        for i, name in enumerate(self.layers):
            h, w = H // (2 ** (i + 1)), W // (2 ** (i + 1))
            k = np.kron(_bilinear_matrix(H, h), _bilinear_matrix(W, w))  # (H*W, h*w)
            self.upsample_mats[name] = jnp.asarray(k.T)                  # (h*w, H*W)

        self._eval_fn = jax.jit(self._forward_eval)
        self._train_fn = jax.jit(self._forward_train)

    # -- feature pyramid (channels-last, channel-padded) ----------------------
    def _extract(self, images):
        # Single layout change at the module boundary: NCHW -> NHWC, pad channels.
        x = jnp.transpose(images.astype(jnp.float32), (0, 2, 3, 1))
        B, H, W, cin = x.shape
        x = jnp.pad(x, ((0, 0), (0, 0), (0, 0), (0, C_PAD - cin)))
        xt = xs = x
        feats_t, feats_s = {}, {}
        for name in self.layers:
            xt = _avg_pool2_nhwc(xt)
            xs = _avg_pool2_nhwc(xs)
            b, h, w, c = xt.shape
            x2 = jnp.stack([xt.reshape(b * h * w, c), xs.reshape(b * h * w, c)])
            wst, bst = self.stacked_params[name]
            y = pw_conv_relu_dual(x2, wst, bst)            # (2, b*h*w, C_PAD)
            xt = y[0].reshape(b, h, w, c)
            xs = y[1].reshape(b, h, w, c)
            feats_t[name] = xt
            feats_s[name] = xs
        return feats_t, feats_s

    def _to_nchw(self, feats):
        """Slice off channel padding and convert to NCHW (PyTorch interface)."""
        out = {}
        for name, cout in zip(self.layers, self.layer_channels):
            f = feats[name]                                 # (B, h, w, C_PAD)
            out[name] = jnp.transpose(f[..., :cout], (0, 3, 1, 2))
        return out

    def _forward_eval(self, images):
        feats_t, feats_s = self._extract(images)
        return anomaly_map_fused(feats_t, feats_s, self.layers,
                                 self.upsample_mats, self.image_size)

    def _forward_train(self, images):
        feats_t, feats_s = self._extract(images)
        return self._to_nchw(feats_t), self._to_nchw(feats_s)

    def __call__(self, images, training=False):
        # tiler is None -> no tiling / untiling.
        # TODO(synk): ImageNet DataLoader auxiliary branch (s_imagenet_out)
        # requires host file I/O + torchvision transforms; omitted.
        if training:
            return self._train_fn(images)
        return self._eval_fn(images)


if __name__ == "__main__":
    key = jax.random.PRNGKey(0)
    images = jax.random.normal(key, (2, 4, 16, 16), dtype=jnp.float32)  # NCHW

    model = STFPMModelPallas(layers=["layer1", "layer2", "layer3"],
                             input_size=(16, 16), in_channels=4)

    # Eval mode: anomaly map.
    amap = model(images, training=False)
    amap = jax.block_until_ready(amap)
    assert amap.shape == (2, 1, 16, 16), amap.shape
    assert bool(jnp.all(jnp.isfinite(amap)))

    # Training mode: feature pyramids (NCHW, real channel counts, like PyTorch).
    t_feats, s_feats = model(images, training=True)
    jax.block_until_ready(jax.tree_util.tree_leaves((t_feats, s_feats)))
    assert t_feats["layer1"].shape == (2, 8, 8, 8)
    assert t_feats["layer3"].shape == (2, 32, 2, 2)

    print("KERNEL_OK")
</pallas_src>

<mosaic_0001>
module attributes {stable_mosaic.version = 11 : i64} {
  func.func @_pw_conv_relu_kernel(%arg0: i32, %arg1: i32, %arg2: memref<1x128x128xf32, #tpu.memory_space<vmem>>, %arg3: memref<1x128x128xf32, #tpu.memory_space<vmem>>, %arg4: memref<1x1x128xf32, #tpu.memory_space<vmem>>, %arg5: memref<1x128x128xf32, #tpu.memory_space<vmem>>) attributes {dimension_semantics = [#tpu.dimension_semantics<parallel>, #tpu.dimension_semantics<parallel>], iteration_bounds = array<i64: 2, 1>, scalar_prefetch = 0 : i64, scratch_operands = 0 : i64, tpu.core_type = #tpu.core_type<tc>, window_params = [{transform_indices = @transform_0, window_bounds = array<i64: 1, 128, 128>}, {transform_indices = @transform_1, window_bounds = array<i64: 1, 128, 128>}, {transform_indices = @transform_2, window_bounds = array<i64: 1, 1, 128>}, {transform_indices = @transform_3, window_bounds = array<i64: 1, 128, 128>}]} {
    %c0 = arith.constant 0 : index
    %c0_0 = arith.constant 0 : index
    %c0_1 = arith.constant 0 : index
    %0 = vector.load %arg2[%c0, %c0_0, %c0_1] : memref<1x128x128xf32, #tpu.memory_space<vmem>>, vector<1x128x128xf32>
    %1 = vector.shape_cast %0 : vector<1x128x128xf32> to vector<128x128xf32>
    %c0_2 = arith.constant 0 : index
    %c0_3 = arith.constant 0 : index
    %c0_4 = arith.constant 0 : index
    %2 = vector.load %arg3[%c0_2, %c0_3, %c0_4] : memref<1x128x128xf32, #tpu.memory_space<vmem>>, vector<1x128x128xf32>
    %3 = vector.shape_cast %2 : vector<1x128x128xf32> to vector<128x128xf32>
    %4 = arith.truncf %1 : vector<128x128xf32> to vector<128x128xbf16>
    %5 = arith.truncf %3 : vector<128x128xf32> to vector<128x128xbf16>
    %cst = arith.constant dense<0.000000e+00> : vector<128x128xf32>
    %6 = tpu.matmul %4, %5, %cst {dimension_numbers = #tpu.dot_dimension_numbers<[1], [0], [0], [1], [0, 0, 1, 1], [], []>} : vector<128x128xbf16>, vector<128x128xbf16>, vector<128x128xf32> -> vector<128x128xf32>
    %c0_5 = arith.constant 0 : index
    %c0_6 = arith.constant 0 : index
    %c0_7 = arith.constant 0 : index
    %7 = vector.load %arg4[%c0_5, %c0_6, %c0_7] : memref<1x1x128xf32, #tpu.memory_space<vmem>>, vector<1x1x128xf32>
    %8 = vector.shape_cast %7 : vector<1x1x128xf32> to vector<1x128xf32>
    %9 = vector.broadcast %8 : vector<1x128xf32> to vector<128x128xf32>
    %10 = arith.addf %6, %9 : vector<128x128xf32>
    %cst_8 = arith.constant 0.000000e+00 : f32
    %11 = vector.broadcast %cst_8 : f32 to vector<128x128xf32>
    %12 = arith.maximumf %10, %11 : vector<128x128xf32>
    %c0_9 = arith.constant 0 : index
    %c0_10 = arith.constant 0 : index
    %c0_11 = arith.constant 0 : index
    %13 = vector.load %arg5[%c0_9, %c0_10, %c0_11] : memref<1x128x128xf32, #tpu.memory_space<vmem>>, vector<1x128x128xf32>
    %14 = vector.shape_cast %13 : vector<1x128x128xf32> to vector<128x128xf32>
    %15 = vector.shape_cast %12 : vector<128x128xf32> to vector<1x128x128xf32>
    tpu.vector_store %arg5[%c0_9, %c0_10, %c0_11], %15 {strides = array<i32>} : memref<1x128x128xf32, #tpu.memory_space<vmem>>, vector<1x128x128xf32>,
    return
  }
  func.func @transform_0(%arg0: i32, %arg1: i32) -> (i32, i32, i32) {
    %c0_i32 = arith.constant 0 : i32
    %c0_i32_0 = arith.constant 0 : i32
    return %arg0, %arg1, %c0_i32 : i32, i32, i32
  }
  func.func @transform_1(%arg0: i32, %arg1: i32) -> (i32, i32, i32) {
    %c0_i32 = arith.constant 0 : i32
    %c0_i32_0 = arith.constant 0 : i32
    %c0_i32_1 = arith.constant 0 : i32
    return %arg0, %c0_i32, %c0_i32_0 : i32, i32, i32
  }
  func.func @transform_2(%arg0: i32, %arg1: i32) -> (i32, i32, i32) {
    %c0_i32 = arith.constant 0 : i32
    %c0_i32_0 = arith.constant 0 : i32
    %c0_i32_1 = arith.constant 0 : i32
    return %arg0, %c0_i32, %c0_i32_0 : i32, i32, i32
  }
  func.func @transform_3(%arg0: i32, %arg1: i32) -> (i32, i32, i32) {
    %c0_i32 = arith.constant 0 : i32
    %c0_i32_0 = arith.constant 0 : i32
    return %arg0, %arg1, %c0_i32 : i32, i32, i32
  }
}

module attributes {stable_mosaic.version = 11 : i64} {
  func.func @_pw_conv_relu_kernel(%arg0: i32, %arg1: i32, %arg2: memref<1x32x128xf32, #tpu.memory_space<vmem>>, %arg3: memref<1x128x128xf32, #tpu.memory_space<vmem>>, %arg4: memref<1x1x128xf32, #tpu.memory_space<vmem>>, %arg5: memref<1x32x128xf32, #tpu.memory_space<vmem>>) attributes {dimension_semantics = [#tpu.dimension_semantics<parallel>, #tpu.dimension_semantics<parallel>], iteration_bounds = array<i64: 2, 1>, scalar_prefetch = 0 : i64, scratch_operands = 0 : i64, tpu.core_type = #tpu.core_type<tc>, window_params = [{transform_indices = @transform_0, window_bounds = array<i64: 1, 32, 128>}, {transform_indices = @transform_1, window_bounds = array<i64: 1, 128, 128>}, {transform_indices = @transform_2, window_bounds = array<i64: 1, 1, 128>}, {transform_indices = @transform_3, window_bounds = array<i64: 1, 32, 128>}]} {
    %c0 = arith.constant 0 : index
    %c0_0 = arith.constant 0 : index
    %c0_1 = arith.constant 0 : index
    %0 = vector.load %arg2[%c0, %c0_0, %c0_1] : memref<1x32x128xf32, #tpu.memory_space<vmem>>, vector<1x32x128xf32>
    %1 = vector.shape_cast %0 : vector<1x32x128xf32> to vector<32x128xf32>
    %c0_2 = arith.constant 0 : index
    %c0_3 = arith.constant 0 : index
    %c0_4 = arith.constant 0 : index
    %2 = vector.load %arg3[%c0_2, %c0_3, %c0_4] : memref<1x128x128xf32, #tpu.memory_space<vmem>>, vector<1x128x128xf32>
    %3 = vector.shape_cast %2 : vector<1x128x128xf32> to vector<128x128xf32>
    %4 = arith.truncf %1 : vector<32x128xf32> to vector<32x128xbf16>
    %5 = arith.truncf %3 : vector<128x128xf32> to vector<128x128xbf16>
    %cst = arith.constant dense<0.000000e+00> : vector<32x128xf32>
    %6 = tpu.matmul %4, %5, %cst {dimension_numbers = #tpu.dot_dimension_numbers<[1], [0], [0], [1], [0, 0, 1, 1], [], []>} : vector<32x128xbf16>, vector<128x128xbf16>, vector<32x128xf32> -> vector<32x128xf32>
    %c0_5 = arith.constant 0 : index
    %c0_6 = arith.constant 0 : index
    %c0_7 = arith.constant 0 : index
    %7 = vector.load %arg4[%c0_5, %c0_6, %c0_7] : memref<1x1x128xf32, #tpu.memory_space<vmem>>, vector<1x1x128xf32>
    %8 = vector.shape_cast %7 : vector<1x1x128xf32> to vector<1x128xf32>
    %9 = vector.broadcast %8 : vector<1x128xf32> to vector<32x128xf32>
    %10 = arith.addf %6, %9 : vector<32x128xf32>
    %cst_8 = arith.constant 0.000000e+00 : f32
    %11 = vector.broadcast %cst_8 : f32 to vector<32x128xf32>
    %12 = arith.maximumf %10, %11 : vector<32x128xf32>
    %c0_9 = arith.constant 0 : index
    %c0_10 = arith.constant 0 : index
    %c0_11 = arith.constant 0 : index
    %13 = vector.load %arg5[%c0_9, %c0_10, %c0_11] : memref<1x32x128xf32, #tpu.memory_space<vmem>>, vector<1x32x128xf32>
    %14 = vector.shape_cast %13 : vector<1x32x128xf32> to vector<32x128xf32>
    %15 = vector.shape_cast %12 : vector<32x128xf32> to vector<1x32x128xf32>
    tpu.vector_store %arg5[%c0_9, %c0_10, %c0_11], %15 {strides = array<i32>} : memref<1x32x128xf32, #tpu.memory_space<vmem>>, vector<1x32x128xf32>,
    return
  }
  func.func @transform_0(%arg0: i32, %arg1: i32) -> (i32, i32, i32) {
    %c0_i32 = arith.constant 0 : i32
    %c0_i32_0 = arith.constant 0 : i32
    return %arg0, %arg1, %c0_i32 : i32, i32, i32
  }
  func.func @transform_1(%arg0: i32, %arg1: i32) -> (i32, i32, i32) {
    %c0_i32 = arith.constant 0 : i32
    %c0_i32_0 = arith.constant 0 : i32
    %c0_i32_1 = arith.constant 0 : i32
    return %arg0, %c0_i32, %c0_i32_0 : i32, i32, i32
  }
  func.func @transform_2(%arg0: i32, %arg1: i32) -> (i32, i32, i32) {
    %c0_i32 = arith.constant 0 : i32
    %c0_i32_0 = arith.constant 0 : i32
    %c0_i32_1 = arith.constant 0 : i32
    return %arg0, %c0_i32, %c0_i32_0 : i32, i32, i32
  }
  func.func @transform_3(%arg0: i32, %arg1: i32) -> (i32, i32, i32) {
    %c0_i32 = arith.constant 0 : i32
    %c0_i32_0 = arith.constant 0 : i32
    return %arg0, %arg1, %c0_i32 : i32, i32, i32
  }
}

module attributes {stable_mosaic.version = 11 : i64} {
  func.func @_pw_conv_relu_kernel(%arg0: i32, %arg1: i32, %arg2: memref<1x8x128xf32, #tpu.memory_space<vmem>>, %arg3: memref<1x128x128xf32, #tpu.memory_space<vmem>>, %arg4: memref<1x1x128xf32, #tpu.memory_space<vmem>>, %arg5: memref<1x8x128xf32, #tpu.memory_space<vmem>>) attributes {dimension_semantics = [#tpu.dimension_semantics<parallel>, #tpu.dimension_semantics<parallel>], iteration_bounds = array<i64: 2, 1>, scalar_prefetch = 0 : i64, scratch_operands = 0 : i64, tpu.core_type = #tpu.core_type<tc>, window_params = [{transform_indices = @transform_0, window_bounds = array<i64: 1, 8, 128>}, {transform_indices = @transform_1, window_bounds = array<i64: 1, 128, 128>}, {transform_indices = @transform_2, window_bounds = array<i64: 1, 1, 128>}, {transform_indices = @transform_3, window_bounds = array<i64: 1, 8, 128>}]} {
    %c0 = arith.constant 0 : index
    %c0_0 = arith.constant 0 : index
    %c0_1 = arith.constant 0 : index
    %0 = vector.load %arg2[%c0, %c0_0, %c0_1] : memref<1x8x128xf32, #tpu.memory_space<vmem>>, vector<1x8x128xf32>
    %1 = vector.shape_cast %0 : vector<1x8x128xf32> to vector<8x128xf32>
    %c0_2 = arith.constant 0 : index
    %c0_3 = arith.constant 0 : index
    %c0_4 = arith.constant 0 : index
    %2 = vector.load %arg3[%c0_2, %c0_3, %c0_4] : memref<1x128x128xf32, #tpu.memory_space<vmem>>, vector<1x128x128xf32>
    %3 = vector.shape_cast %2 : vector<1x128x128xf32> to vector<128x128xf32>
    %4 = arith.truncf %1 : vector<8x128xf32> to vector<8x128xbf16>
    %5 = arith.truncf %3 : vector<128x128xf32> to vector<128x128xbf16>
    %cst = arith.constant dense<0.000000e+00> : vector<8x128xf32>
    %6 = tpu.matmul %4, %5, %cst {dimension_numbers = #tpu.dot_dimension_numbers<[1], [0], [0], [1], [0, 0, 1, 1], [], []>} : vector<8x128xbf16>, vector<128x128xbf16>, vector<8x128xf32> -> vector<8x128xf32>
    %c0_5 = arith.constant 0 : index
    %c0_6 = arith.constant 0 : index
    %c0_7 = arith.constant 0 : index
    %7 = vector.load %arg4[%c0_5, %c0_6, %c0_7] : memref<1x1x128xf32, #tpu.memory_space<vmem>>, vector<1x1x128xf32>
    %8 = vector.shape_cast %7 : vector<1x1x128xf32> to vector<1x128xf32>
    %9 = vector.broadcast %8 : vector<1x128xf32> to vector<8x128xf32>
    %10 = arith.addf %6, %9 : vector<8x128xf32>
    %cst_8 = arith.constant 0.000000e+00 : f32
    %11 = vector.broadcast %cst_8 : f32 to vector<8x128xf32>
    %12 = arith.maximumf %10, %11 : vector<8x128xf32>
    %c0_9 = arith.constant 0 : index
    %c0_10 = arith.constant 0 : index
    %c0_11 = arith.constant 0 : index
    %13 = vector.load %arg5[%c0_9, %c0_10, %c0_11] : memref<1x8x128xf32, #tpu.memory_space<vmem>>, vector<1x8x128xf32>
    %14 = vector.shape_cast %13 : vector<1x8x128xf32> to vector<8x128xf32>
    %15 = vector.shape_cast %12 : vector<8x128xf32> to vector<1x8x128xf32>
    tpu.vector_store %arg5[%c0_9, %c0_10, %c0_11], %15 {strides = array<i32>} : memref<1x8x128xf32, #tpu.memory_space<vmem>>, vector<1x8x128xf32>,
    return
  }
  func.func @transform_0(%arg0: i32, %arg1: i32) -> (i32, i32, i32) {
    %c0_i32 = arith.constant 0 : i32
    %c0_i32_0 = arith.constant 0 : i32
    return %arg0, %arg1, %c0_i32 : i32, i32, i32
  }
  func.func @transform_1(%arg0: i32, %arg1: i32) -> (i32, i32, i32) {
    %c0_i32 = arith.constant 0 : i32
    %c0_i32_0 = arith.constant 0 : i32
    %c0_i32_1 = arith.constant 0 : i32
    return %arg0, %c0_i32, %c0_i32_0 : i32, i32, i32
  }
  func.func @transform_2(%arg0: i32, %arg1: i32) -> (i32, i32, i32) {
    %c0_i32 = arith.constant 0 : i32
    %c0_i32_0 = arith.constant 0 : i32
    %c0_i32_1 = arith.constant 0 : i32
    return %arg0, %c0_i32, %c0_i32_0 : i32, i32, i32
  }
  func.func @transform_3(%arg0: i32, %arg1: i32) -> (i32, i32, i32) {
    %c0_i32 = arith.constant 0 : i32
    %c0_i32_0 = arith.constant 0 : i32
    return %arg0, %arg1, %c0_i32 : i32, i32, i32
  }
}

module attributes {stable_mosaic.version = 11 : i64} {
  func.func @_anomaly_map_kernel(%arg0: i32, %arg1: memref<1x64x128xf32, #tpu.memory_space<vmem>>, %arg2: memref<1x64x128xf32, #tpu.memory_space<vmem>>, %arg3: memref<64x256xf32, #tpu.memory_space<vmem>>, %arg4: memref<1x16x128xf32, #tpu.memory_space<vmem>>, %arg5: memref<1x16x128xf32, #tpu.memory_space<vmem>>, %arg6: memref<16x256xf32, #tpu.memory_space<vmem>>, %arg7: memref<1x4x128xf32, #tpu.memory_space<vmem>>, %arg8: memref<1x4x128xf32, #tpu.memory_space<vmem>>, %arg9: memref<4x256xf32, #tpu.memory_space<vmem>>, %arg10: memref<1x1x256xf32, #tpu.memory_space<vmem>>) attributes {dimension_semantics = [#tpu.dimension_semantics<parallel>], iteration_bounds = array<i64: 2>, scalar_prefetch = 0 : i64, scratch_operands = 0 : i64, tpu.core_type = #tpu.core_type<tc>, window_params = [{transform_indices = @transform_0, window_bounds = array<i64: 1, 64, 128>}, {transform_indices = @transform_1, window_bounds = array<i64: 1, 64, 128>}, {pipeline_mode = #tpu.pipeline_mode<synchronous>, transform_indices = @transform_2, window_bounds = array<i64: 64, 256>}, {transform_indices = @transform_3, window_bounds = array<i64: 1, 16, 128>}, {transform_indices = @transform_4, window_bounds = array<i64: 1, 16, 128>}, {pipeline_mode = #tpu.pipeline_mode<synchronous>, transform_indices = @transform_5, window_bounds = array<i64: 16, 256>}, {transform_indices = @transform_6, window_bounds = array<i64: 1, 4, 128>}, {transform_indices = @transform_7, window_bounds = array<i64: 1, 4, 128>}, {pipeline_mode = #tpu.pipeline_mode<synchronous>, transform_indices = @transform_8, window_bounds = array<i64: 4, 256>}, {transform_indices = @transform_9, window_bounds = array<i64: 1, 1, 256>}]} {
    %c0 = arith.constant 0 : index
    %c0_0 = arith.constant 0 : index
    %c0_1 = arith.constant 0 : index
    %0 = vector.load %arg1[%c0, %c0_0, %c0_1] : memref<1x64x128xf32, #tpu.memory_space<vmem>>, vector<1x64x128xf32>
    %1 = vector.shape_cast %0 : vector<1x64x128xf32> to vector<64x128xf32>
    %c0_2 = arith.constant 0 : index
    %c0_3 = arith.constant 0 : index
    %c0_4 = arith.constant 0 : index
    %2 = vector.load %arg2[%c0_2, %c0_3, %c0_4] : memref<1x64x128xf32, #tpu.memory_space<vmem>>, vector<1x64x128xf32>
    %3 = vector.shape_cast %2 : vector<1x64x128xf32> to vector<64x128xf32>
    %c0_5 = arith.constant 0 : index
    %c0_6 = arith.constant 0 : index
    %4 = vector.load %arg3[%c0_5, %c0_6] : memref<64x256xf32, #tpu.memory_space<vmem>>, vector<64x256xf32>
    %5 = arith.mulf %1, %1 : vector<64x128xf32>
    %cst = arith.constant dense<0.000000e+00> : vector<64xf32>
    %6 = vector.multi_reduction <add>, %5, %cst [1] : vector<64x128xf32> to vector<64xf32>
    %7 = arith.mulf %3, %3 : vector<64x128xf32>
    %cst_7 = arith.constant dense<0.000000e+00> : vector<64xf32>
    %8 = vector.multi_reduction <add>, %7, %cst_7 [1] : vector<64x128xf32> to vector<64xf32>
    %9 = arith.mulf %1, %3 : vector<64x128xf32>
    %cst_8 = arith.constant dense<0.000000e+00> : vector<64xf32>
    %10 = vector.multi_reduction <add>, %9, %cst_8 [1] : vector<64x128xf32> to vector<64xf32>
    %cst_9 = arith.constant 1.000000e-24 : f32
    %11 = vector.broadcast %cst_9 : f32 to vector<64xf32>
    %12 = arith.maximumf %6, %11 : vector<64xf32>
    %13 = math.rsqrt %12 : vector<64xf32>
    %cst_10 = arith.constant 1.000000e-24 : f32
    %14 = vector.broadcast %cst_10 : f32 to vector<64xf32>
    %15 = arith.maximumf %8, %14 : vector<64xf32>
    %16 = math.rsqrt %15 : vector<64xf32>
    %17 = arith.mulf %6, %13 : vector<64xf32>
    %18 = arith.mulf %17, %13 : vector<64xf32>
    %19 = arith.mulf %8, %16 : vector<64xf32>
    %20 = arith.mulf %19, %16 : vector<64xf32>
    %21 = arith.addf %18, %20 : vector<64xf32>
    %cst_11 = arith.constant 5.000000e-01 : f32
    %22 = vector.broadcast %cst_11 : f32 to vector<64xf32>
    %23 = arith.mulf %22, %21 : vector<64xf32>
    %24 = arith.mulf %13, %16 : vector<64xf32>
    %25 = arith.mulf %10, %24 : vector<64xf32>
    %26 = arith.subf %23, %25 : vector<64xf32>
    %27 = vector.shape_cast %26 : vector<64xf32> to vector<1x64xf32>
    %28 = arith.truncf %27 : vector<1x64xf32> to vector<1x64xbf16>
    %29 = arith.truncf %4 : vector<64x256xf32> to vector<64x256xbf16>
    %cst_12 = arith.constant dense<0.000000e+00> : vector<1x256xf32>
    %30 = tpu.matmul %28, %29, %cst_12 {dimension_numbers = #tpu.dot_dimension_numbers<[1], [0], [0], [1], [0, 0, 1, 1], [], []>} : vector<1x64xbf16>, vector<64x256xbf16>, vector<1x256xf32> -> vector<1x256xf32>
    %c0_13 = arith.constant 0 : index
    %c0_14 = arith.constant 0 : index
    %c0_15 = arith.constant 0 : index
    %31 = vector.load %arg4[%c0_13, %c0_14, %c0_15] : memref<1x16x128xf32, #tpu.memory_space<vmem>>, vector<1x16x128xf32>
    %32 = vector.shape_cast %31 : vector<1x16x128xf32> to vector<16x128xf32>
    %c0_16 = arith.constant 0 : index
    %c0_17 = arith.constant 0 : index
    %c0_18 = arith.constant 0 : index
    %33 = vector.load %arg5[%c0_16, %c0_17, %c0_18] : memref<1x16x128xf32, #tpu.memory_space<vmem>>, vector<1x16x128xf32>
    %34 = vector.shape_cast %33 : vector<1x16x128xf32> to vector<16x128xf32>
    %c0_19 = arith.constant 0 : index
    %c0_20 = arith.constant 0 : index
    %35 = vector.load %arg6[%c0_19, %c0_20] : memref<16x256xf32, #tpu.memory_space<vmem>>, vector<16x256xf32>
    %36 = arith.mulf %32, %32 : vector<16x128xf32>
    %cst_21 = arith.constant dense<0.000000e+00> : vector<16xf32>
    %37 = vector.multi_reduction <add>, %36, %cst_21 [1] : vector<16x128xf32> to vector<16xf32>
    %38 = arith.mulf %34, %34 : vector<16x128xf32>
    %cst_22 = arith.constant dense<0.000000e+00> : vector<16xf32>
    %39 = vector.multi_reduction <add>, %38, %cst_22 [1] : vector<16x128xf32> to vector<16xf32>
    %40 = arith.mulf %32, %34 : vector<16x128xf32>
    %cst_23 = arith.constant dense<0.000000e+00> : vector<16xf32>
    %41 = vector.multi_reduction <add>, %40, %cst_23 [1] : vector<16x128xf32> to vector<16xf32>
    %cst_24 = arith.constant 1.000000e-24 : f32
    %42 = vector.broadcast %cst_24 : f32 to vector<16xf32>
    %43 = arith.maximumf %37, %42 : vector<16xf32>
    %44 = math.rsqrt %43 : vector<16xf32>
    %cst_25 = arith.constant 1.000000e-24 : f32
    %45 = vector.broadcast %cst_25 : f32 to vector<16xf32>
    %46 = arith.maximumf %39, %45 : vector<16xf32>
    %47 = math.rsqrt %46 : vector<16xf32>
    %48 = arith.mulf %37, %44 : vector<16xf32>
    %49 = arith.mulf %48, %44 : vector<16xf32>
    %50 = arith.mulf %39, %47 : vector<16xf32>
    %51 = arith.mulf %50, %47 : vector<16xf32>
    %52 = arith.addf %49, %51 : vector<16xf32>
    %cst_26 = arith.constant 5.000000e-01 : f32
    %53 = vector.broadcast %cst_26 : f32 to vector<16xf32>
    %54 = arith.mulf %53, %52 : vector<16xf32>
    %55 = arith.mulf %44, %47 : vector<16xf32>
    %56 = arith.mulf %41, %55 : vector<16xf32>
    %57 = arith.subf %54, %56 : vector<16xf32>
    %58 = vector.shape_cast %57 : vector<16xf32> to vector<1x16xf32>
    %59 = arith.truncf %58 : vector<1x16xf32> to vector<1x16xbf16>
    %60 = arith.truncf %35 : vector<16x256xf32> to vector<16x256xbf16>
    %cst_27 = arith.constant dense<0.000000e+00> : vector<1x256xf32>
    %61 = tpu.matmul %59, %60, %cst_27 {dimension_numbers = #tpu.dot_dimension_numbers<[1], [0], [0], [1], [0, 0, 1, 1], [], []>} : vector<1x16xbf16>, vector<16x256xbf16>, vector<1x256xf32> -> vector<1x256xf32>
    %62 = arith.mulf %30, %61 : vector<1x256xf32>
    %c0_28 = arith.constant 0 : index
    %c0_29 = arith.constant 0 : index
    %c0_30 = arith.constant 0 : index
    %63 = vector.load %arg7[%c0_28, %c0_29, %c0_30] : memref<1x4x128xf32, #tpu.memory_space<vmem>>, vector<1x4x128xf32>
    %64 = vector.shape_cast %63 : vector<1x4x128xf32> to vector<4x128xf32>
    %c0_31 = arith.constant 0 : index
    %c0_32 = arith.constant 0 : index
    %c0_33 = arith.constant 0 : index
    %65 = vector.load %arg8[%c0_31, %c0_32, %c0_33] : memref<1x4x128xf32, #tpu.memory_space<vmem>>, vector<1x4x128xf32>
    %66 = vector.shape_cast %65 : vector<1x4x128xf32> to vector<4x128xf32>
    %c0_34 = arith.constant 0 : index
    %c0_35 = arith.constant 0 : index
    %67 = vector.load %arg9[%c0_34, %c0_35] : memref<4x256xf32, #tpu.memory_space<vmem>>, vector<4x256xf32>
    %68 = arith.mulf %64, %64 : vector<4x128xf32>
    %cst_36 = arith.constant dense<0.000000e+00> : vector<4xf32>
    %69 = vector.multi_reduction <add>, %68, %cst_36 [1] : vector<4x128xf32> to vector<4xf32>
    %70 = arith.mulf %66, %66 : vector<4x128xf32>
    %cst_37 = arith.constant dense<0.000000e+00> : vector<4xf32>
    %71 = vector.multi_reduction <add>, %70, %cst_37 [1] : vector<4x128xf32> to vector<4xf32>
    %72 = arith.mulf %64, %66 : vector<4x128xf32>
    %cst_38 = arith.constant dense<0.000000e+00> : vector<4xf32>
    %73 = vector.multi_reduction <add>, %72, %cst_38 [1] : vector<4x128xf32> to vector<4xf32>
    %cst_39 = arith.constant 1.000000e-24 : f32
    %74 = vector.broadcast %cst_39 : f32 to vector<4xf32>
    %75 = arith.maximumf %69, %74 : vector<4xf32>
    %76 = math.rsqrt %75 : vector<4xf32>
    %cst_40 = arith.constant 1.000000e-24 : f32
    %77 = vector.broadcast %cst_40 : f32 to vector<4xf32>
    %78 = arith.maximumf %71, %77 : vector<4xf32>
    %79 = math.rsqrt %78 : vector<4xf32>
    %80 = arith.mulf %69, %76 : vector<4xf32>
    %81 = arith.mulf %80, %76 : vector<4xf32>
    %82 = arith.mulf %71, %79 : vector<4xf32>
    %83 = arith.mulf %82, %79 : vector<4xf32>
    %84 = arith.addf %81, %83 : vector<4xf32>
    %cst_41 = arith.constant 5.000000e-01 : f32
    %85 = vector.broadcast %cst_41 : f32 to vector<4xf32>
    %86 = arith.mulf %85, %84 : vector<4xf32>
    %87 = arith.mulf %76, %79 : vector<4xf32>
    %88 = arith.mulf %73, %87 : vector<4xf32>
    %89 = arith.subf %86, %88 : vector<4xf32>
    %90 = vector.shape_cast %89 : vector<4xf32> to vector<1x4xf32>
    %91 = arith.truncf %90 : vector<1x4xf32> to vector<1x4xbf16>
    %92 = arith.truncf %67 : vector<4x256xf32> to vector<4x256xbf16>
    %cst_42 = arith.constant dense<0.000000e+00> : vector<1x256xf32>
    %93 = tpu.matmul %91, %92, %cst_42 {dimension_numbers = #tpu.dot_dimension_numbers<[1], [0], [0], [1], [0, 0, 1, 1], [], []>} : vector<1x4xbf16>, vector<4x256xbf16>, vector<1x256xf32> -> vector<1x256xf32>
    %94 = arith.mulf %62, %93 : vector<1x256xf32>
    %c0_43 = arith.constant 0 : index
    %c0_44 = arith.constant 0 : index
    %c0_45 = arith.constant 0 : index
    %95 = vector.load %arg10[%c0_43, %c0_44, %c0_45] : memref<1x1x256xf32, #tpu.memory_space<vmem>>, vector<1x1x256xf32>
    %96 = vector.shape_cast %95 : vector<1x1x256xf32> to vector<1x256xf32>
    %97 = vector.shape_cast %94 : vector<1x256xf32> to vector<1x1x256xf32>
    tpu.vector_store %arg10[%c0_43, %c0_44, %c0_45], %97 {strides = array<i32>} : memref<1x1x256xf32, #tpu.memory_space<vmem>>, vector<1x1x256xf32>,
    return
  }
  func.func @transform_0(%arg0: i32) -> (i32, i32, i32) {
    %c0_i32 = arith.constant 0 : i32
    %c0_i32_0 = arith.constant 0 : i32
    %c0_i32_1 = arith.constant 0 : i32
    return %arg0, %c0_i32, %c0_i32_0 : i32, i32, i32
  }
  func.func @transform_1(%arg0: i32) -> (i32, i32, i32) {
    %c0_i32 = arith.constant 0 : i32
    %c0_i32_0 = arith.constant 0 : i32
    %c0_i32_1 = arith.constant 0 : i32
    return %arg0, %c0_i32, %c0_i32_0 : i32, i32, i32
  }
  func.func @transform_2(%arg0: i32) -> (i32, i32) {
    %c0_i32 = arith.constant 0 : i32
    %c0_i32_0 = arith.constant 0 : i32
    %c0_i32_1 = arith.constant 0 : i32
    return %c0_i32, %c0_i32_0 : i32, i32
  }
  func.func @transform_3(%arg0: i32) -> (i32, i32, i32) {
    %c0_i32 = arith.constant 0 : i32
    %c0_i32_0 = arith.constant 0 : i32
    %c0_i32_1 = arith.constant 0 : i32
    return %arg0, %c0_i32, %c0_i32_0 : i32, i32, i32
  }
  func.func @transform_4(%arg0: i32) -> (i32, i32, i32) {
    %c0_i32 = arith.constant 0 : i32
    %c0_i32_0 = arith.constant 0 : i32
    %c0_i32_1 = arith.constant 0 : i32
    return %arg0, %c0_i32, %c0_i32_0 : i32, i32, i32
  }
  func.func @transform_5(%arg0: i32) -> (i32, i32) {
    %c0_i32 = arith.constant 0 : i32
    %c0_i32_0 = arith.constant 0 : i32
    %c0_i32_1 = arith.constant 0 : i32
    return %c0_i32, %c0_i32_0 : i32, i32
  }
  func.func @transform_6(%arg0: i32) -> (i32, i32, i32) {
    %c0_i32 = arith.constant 0 : i32
    %c0_i32_0 = arith.constant 0 : i32
    %c0_i32_1 = arith.constant 0 : i32
    return %arg0, %c0_i32, %c0_i32_0 : i32, i32, i32
  }
  func.func @transform_7(%arg0: i32) -> (i32, i32, i32) {
    %c0_i32 = arith.constant 0 : i32
    %c0_i32_0 = arith.constant 0 : i32
    %c0_i32_1 = arith.constant 0 : i32
    return %arg0, %c0_i32, %c0_i32_0 : i32, i32, i32
  }
  func.func @transform_8(%arg0: i32) -> (i32, i32) {
    %c0_i32 = arith.constant 0 : i32
    %c0_i32_0 = arith.constant 0 : i32
    %c0_i32_1 = arith.constant 0 : i32
    return %c0_i32, %c0_i32_0 : i32, i32
  }
  func.func @transform_9(%arg0: i32) -> (i32, i32, i32) {
    %c0_i32 = arith.constant 0 : i32
    %c0_i32_0 = arith.constant 0 : i32
    %c0_i32_1 = arith.constant 0 : i32
    return %arg0, %c0_i32, %c0_i32_0 : i32, i32, i32
  }
}

</mosaic_0001>

<bundles_post_ra>
// kernel: _forward_eval.5
= control target key start
LH: loop header
LB: loop body
LE: loop exit
PB: predicated region body
PF: predicated region fallthrough
CT: control target
= control target key end

     0   :  { %s562_s12 = smov 0   ;;  %s564_s13 = smov 0   ;;  %s634_s0 = inlined_call_operand.vmem [shape: f32[2,32,128], index: 0, kind: input, shape index: {}]   ;;  %s635_s1 = inlined_call_operand.vmem [shape: f32[2,128,128], index: 1, kind: input, shape index: {}]   ;;  %s636_s2 = inlined_call_operand.vmem [shape: f32[2,1,128], index: 2, kind: input, shape index: {}]   ;;  %s637_s3 = inlined_call_operand.vmem [shape: f32[2,32,128], index: 3, kind: output, shape index: {}]  }
   0x1   :  { %s566_s14 = smov 0  }
   0x2 LB: > { %s25_s15 = sadd.s32 1, %s536_s13  ;;  %p451_p0 = scmp.ge.s32.totalorder %s540_s14, 1  ;;  %s540_s14 = sphi %s566_s14, %s13_s14   ;;  %s536_s13 = sphi %s564_s13, %s639_s13   ;;  %s532_s12 = sphi %s562_s12, %s638_s12  }
   0x3   : > { %p27_p1 = scmp.ge.s32.totalorder %s25_s15, 2  ;;  %p176_p2 = scmp.lt.s32.totalorder %s540_s14, 3 }
   0x5   : > { %s641_s15 = smov (%p27_p1, %s25_s15), 0  ;;  %p177_p3 = pnand %p451_p0, %p176_p2 }
   0x6   : > { %p217_p4 = scmp.lt.s32.totalorder (!%p177_p3), %s532_s12, 1 }
   0x7   : > { %180 = sbr.rel (%p177_p3) target bundleno = 254 (0xfe), region = 32 }
   0xc   : > { %s643_s12 = smov (!%p217_p4, %s532_s12), 1 }
   0xd   : > { %s462_s16 = sshll.u32 %s643_s12, 7  ;;  %s461_s20 = sshll.u32 %s643_s12, 5 }
   0xe   : > { %s586_s19 = scalar_lea.vmem %s635_s1, %s462_s16  ;;  %s600_s23 = scalar_lea.vmem %s634_s0, %s461_s20 }
   0xf   : > { %v263_v0 = vld [vmem:[%s586_s19 + $0x70] sm:$0xff]  ;;  %v264_v1 = vld [vmem:[%s586_s19 + $0x78] sm:$0xff]  ;;  %v261_v2 = vld [vmem:[%s586_s19 + $0x60] sm:$0xff]  ;;  %s233_s26 = scalar_lea.vmem %s636_s2, %s643_s12  ;;  %s242_s29 = scalar_lea.vmem %s637_s3, %s461_s20 }
  0x10   : > { %v274_v3 = vpack.c.bf16 %v264_v1, %v263_v0  ;;  %v262_v4 = vld [vmem:[%s586_s19 + $0x68] sm:$0xff]  ;;  %v259_v6 = vld [vmem:[%s586_s19 + $0x50] sm:$0xff]  ;;  %v260_v7 = vld [vmem:[%s586_s19 + $0x58] sm:$0xff] }
  0x11   : > { %v273_v5 = vpack.c.bf16 %v262_v4, %v261_v2  ;;  %v272_v8 = vpack.c.bf16 %v260_v7, %v259_v6  ;;  %v245_v9 = vld [vmem:[%s600_s23] sm:$0xff]  ;;  %v246_v10 = vld [vmem:[%s600_s23 + $0x8] sm:$0xff]  ;;  %v255_v15 = vld [vmem:[%s586_s19 + $0x30] sm:$0xff] }
  0x12   : > { %474 = vmatprep.subr.bf16.mxu0 %v274_v3  ;;  %v257_v11 = vld [vmem:[%s586_s19 + $0x40] sm:$0xff]  ;;  %v258_v12 = vld [vmem:[%s586_s19 + $0x48] sm:$0xff]  ;;  %v265_v13 = vpack.c.bf16 %v246_v10, %v245_v9  ;;  %v256_v16 = vld [vmem:[%s586_s19 + $0x38] sm:$0xff] }
  0x13   : > { %475 = vmatpush3.bf16.msra.mxu0 %v274_v3  ;;  %v271_v14 = vpack.c.bf16 %v258_v12, %v257_v11  ;;  %v270_v17 = vpack.c.bf16 %v256_v16, %v255_v15  ;;  %v253_v18 = vld [vmem:[%s586_s19 + $0x20] sm:$0xff]  ;;  %v254_v19 = vld [vmem:[%s586_s19 + $0x28] sm:$0xff]  ;;  %v251_v21 = vld [vmem:[%s586_s19 + $0x10] sm:$0xff] }
  0x14   : > { %476 = vmatprep.subr.bf16.mxu0 %v273_v5  ;;  %490 = vmatprep.mubr.bf16.mxu0 %v265_v13  ;;  %v269_v20 = vpack.c.bf16 %v254_v19, %v253_v18  ;;  %v252_v22 = vld [vmem:[%s586_s19 + $0x18] sm:$0xff]  ;;  %v249_v24 = vld [vmem:[%s586_s19] sm:$0xff]  ;;  %v250_v25 = vld [vmem:[%s586_s19 + $0x8] sm:$0xff] }
  0x15   : > { %v268_v23 = vpack.c.bf16 %v252_v22, %v251_v21  ;;  %v267_v26 = vpack.c.bf16 %v250_v25, %v249_v24  ;;  %v247_v27 = vld [vmem:[%s600_s23 + $0x10] sm:$0xff]  ;;  %v248_v28 = vld [vmem:[%s600_s23 + $0x18] sm:$0xff]  ;;  %v458_v30 = vld [vmem:[%s233_s26] ss:$0 sm:$0xff] }
  0x16   : > { %v266_v29 = vpack.c.bf16 %v248_v28, %v247_v27 }
  0x17   : > { %477 = vmatpush3.bf16.msra.mxu0 %v273_v5 }
  0x18   : > { %478 = vmatprep.subr.bf16.mxu0 %v272_v8 }
  0x1b   : > { %479 = vmatpush3.bf16.msra.mxu0 %v272_v8 }
  0x1c   : > { %480 = vmatprep.subr.bf16.mxu0 %v271_v14 }
  0x1f   : > { %481 = vmatpush3.bf16.msra.mxu0 %v271_v14 }
  0x20   : > { %482 = vmatprep.subr.bf16.mxu0 %v270_v17 }
  0x23   : > { %483 = vmatpush3.bf16.msra.mxu0 %v270_v17 }
  0x24   : > { %484 = vmatprep.subr.bf16.mxu0 %v269_v20 }
  0x27   : > { %485 = vmatpush3.bf16.msra.mxu0 %v269_v20 }
  0x28   : > { %486 = vmatprep.subr.bf16.mxu0 %v268_v23 }
  0x2b   : > { %487 = vmatpush3.bf16.msra.mxu0 %v268_v23 }
  0x2c   : > { %488 = vmatprep.subr.bf16.mxu0 %v267_v26 }
  0x2f   : > { %489 = vmatpush3.bf16.msra.mxu0 %v267_v26 }
  0x32   : > { %491 = vmatmul.mubr.bf16.vlgmr.msra.gmra.mxu0 %v266_v29 }
  0xf2   : > { %v492_v31 = vpop.f32.mrf.mxu0 }
  0xf3   : > { %v325_v32 = vadd.f32 %v492_v31, %v458_v30 }
  0xf4   : > { %v316_v33 = vpop.f32.mrf.mxu0 }
  0xf5   : > { %v333_v34 = vmax.f32 %v325_v32, 0.0  ;;  %v317_v35 = vadd.f32 %v458_v30, %v316_v33 }
  0xf6   : > { %v493_v36 = vpop.f32.mrf.mxu0 }
  0xf7   : > { %337 = vst [vmem:[%s242_s29 + $0x10] sm:$0xff] %v333_v34  ;;  %v331_v37 = vmax.f32 %v317_v35, 0.0  ;;  %v328_v38 = vadd.f32 %v493_v36, %v458_v30 }
  0xf8   : > { %v319_v39 = vpop.f32.mrf.mxu0 }
  0xf9   : > { %335 = vst [vmem:[%s242_s29] sm:$0xff] %v331_v37  ;;  %v334_v40 = vmax.f32 %v328_v38, 0.0  ;;  %v320_v41 = vadd.f32 %v458_v30, %v319_v39 }
  0xfb   : > { %338 = vst [vmem:[%s242_s29 + $0x18] sm:$0xff] %v334_v40  ;;  %v332_v42 = vmax.f32 %v320_v41, 0.0 }
  0xfd   : > { %336 = vst [vmem:[%s242_s29 + $0x8] sm:$0xff] %v332_v42 }
  0xfe PF: > { %s13_s14 = sadd.s32 1, %s540_s14   ;;  %s638_s12 = smov %s536_s13 }
  0xff   : > { %p10_p5 = scmp.ge.s32.totalorder %s13_s14, 4   ;;  %s639_s13 = smov %s641_s15 }
 0x101   :  { %12 = sbr.rel (!%p10_p5) target bundleno = 2 (0x2), region = 68 }

// kernel: _forward_eval.4
= control target key start
LH: loop header
LB: loop body
LE: loop exit
PB: predicated region body
PF: predicated region fallthrough
CT: control target
= control target key end

     0   :  { %s686_s12 = smov 0   ;;  %s688_s13 = smov 0   ;;  %s788_s0 = inlined_call_operand.vmem [shape: f32[2,128,128], index: 0, kind: input, shape index: {}]   ;;  %s789_s1 = inlined_call_operand.vmem [shape: f32[2,128,128], index: 1, kind: input, shape index: {}]   ;;  %s790_s2 = inlined_call_operand.vmem [shape: f32[2,1,128], index: 2, kind: input, shape index: {}]   ;;  %s791_s3 = inlined_call_operand.vmem [shape: f32[2,128,128], index: 3, kind: output, shape index: {}]  }
   0x1   :  { %s690_s14 = smov 0  }
   0x2 LB: > { %s25_s15 = sadd.s32 1, %s660_s13  ;;  %p541_p0 = scmp.ge.s32.totalorder %s664_s14, 1  ;;  %s664_s14 = sphi %s690_s14, %s13_s14   ;;  %s660_s13 = sphi %s688_s13, %s793_s13   ;;  %s656_s12 = sphi %s686_s12, %s792_s12  }
   0x3   : > { %p27_p1 = scmp.ge.s32.totalorder %s25_s15, 2  ;;  %p176_p2 = scmp.lt.s32.totalorder %s664_s14, 3 }
   0x5   : > { %s795_s15 = smov (%p27_p1, %s25_s15), 0  ;;  %p177_p3 = pnand %p541_p0, %p176_p2 }
   0x6   : > { %p217_p4 = scmp.lt.s32.totalorder (!%p177_p3), %s656_s12, 1 }
   0x7   : > { %180 = sbr.rel (%p177_p3) target bundleno = 262 (0x106), region = 32 }
   0xc   : > { %s797_s12 = smov (!%p217_p4, %s656_s12), 1 }
   0xd   : > { %s707_s16 = sshll.u32 %s797_s12, 7  ;;  %s233_s25 = scalar_lea.vmem %s790_s2, %s797_s12 }
   0xe   : > { %s713_s19 = scalar_lea.vmem %s789_s1, %s707_s16  ;;  %s725_s22 = scalar_lea.vmem %s788_s0, %s707_s16  ;;  %v548_v48 = vld [vmem:[%s233_s25] ss:$0 sm:$0xff] }
   0xf   : > { %v275_v0 = vld [vmem:[%s713_s19 + $0x70] sm:$0xff]  ;;  %v276_v1 = vld [vmem:[%s713_s19 + $0x78] sm:$0xff]  ;;  %v273_v2 = vld [vmem:[%s713_s19 + $0x60] sm:$0xff]  ;;  %s761_s28 = scalar_lea.vmem %s791_s3, %s707_s16 }
  0x10   : > { %v292_v3 = vpack.c.bf16 %v276_v1, %v275_v0  ;;  %v274_v4 = vld [vmem:[%s713_s19 + $0x68] sm:$0xff]  ;;  %v271_v6 = vld [vmem:[%s713_s19 + $0x50] sm:$0xff]  ;;  %v272_v7 = vld [vmem:[%s713_s19 + $0x58] sm:$0xff] }
  0x11   : > { %v291_v5 = vpack.c.bf16 %v274_v4, %v273_v2  ;;  %v290_v8 = vpack.c.bf16 %v272_v7, %v271_v6  ;;  %v269_v9 = vld [vmem:[%s713_s19 + $0x40] sm:$0xff]  ;;  %v246_v11 = vld [vmem:[%s725_s22 + $0x8] sm:$0xff]  ;;  %v267_v18 = vld [vmem:[%s713_s19 + $0x30] sm:$0xff] }
  0x12   : > { %570 = vmatprep.subr.bf16.mxu0 %v292_v3  ;;  %602 = vmatprep.subr.bf16.mxu1 %v292_v3  ;;  %v245_v10 = vld [vmem:[%s725_s22] sm:$0xff]  ;;  %v270_v12 = vld [vmem:[%s713_s19 + $0x48] sm:$0xff]  ;;  %v268_v19 = vld [vmem:[%s713_s19 + $0x38] sm:$0xff] }
  0x13   : > { %571 = vmatpush3.bf16.msra.mxu0 %v292_v3  ;;  %610 = vmatpush3.bf16.msra.mxu1 %v292_v3  ;;  %v277_v13 = vpack.c.bf16 %v246_v11, %v245_v10  ;;  %v253_v14 = vld [vmem:[%s725_s22 + $0x40] sm:$0xff]  ;;  %v254_v15 = vld [vmem:[%s725_s22 + $0x48] sm:$0xff]  ;;  %v289_v17 = vpack.c.bf16 %v270_v12, %v269_v9  ;;  %v288_v20 = vpack.c.bf16 %v268_v19, %v267_v18  ;;  %v263_v24 = vld [vmem:[%s713_s19 + $0x10] sm:$0xff] }
  0x14   : > { %572 = vmatprep.subr.bf16.mxu0 %v291_v5  ;;  %603 = vmatprep.subr.bf16.mxu1 %v291_v5  ;;  %v281_v16 = vpack.c.bf16 %v254_v15, %v253_v14  ;;  %v265_v21 = vld [vmem:[%s713_s19 + $0x20] sm:$0xff]  ;;  %v266_v22 = vld [vmem:[%s713_s19 + $0x28] sm:$0xff]  ;;  %v264_v25 = vld [vmem:[%s713_s19 + $0x18] sm:$0xff] }
  0x15   : > { %586 = vmatprep.mubr.bf16.mxu0 %v277_v13  ;;  %v287_v23 = vpack.c.bf16 %v266_v22, %v265_v21  ;;  %v286_v26 = vpack.c.bf16 %v264_v25, %v263_v24  ;;  %v261_v27 = vld [vmem:[%s713_s19] sm:$0xff]  ;;  %v262_v28 = vld [vmem:[%s713_s19 + $0x8] sm:$0xff]  ;;  %v247_v30 = vld [vmem:[%s725_s22 + $0x10] sm:$0xff] }
  0x16   : > { %594 = vmatprep.mubr.bf16.mxu1 %v281_v16  ;;  %v285_v29 = vpack.c.bf16 %v262_v28, %v261_v27  ;;  %v248_v31 = vld [vmem:[%s725_s22 + $0x18] sm:$0xff]  ;;  %v255_v32 = vld [vmem:[%s725_s22 + $0x50] sm:$0xff]  ;;  %v249_v34 = vld [vmem:[%s725_s22 + $0x20] sm:$0xff] }
  0x17   : > { %573 = vmatpush3.bf16.msra.mxu0 %v291_v5  ;;  %611 = vmatpush3.bf16.msra.mxu1 %v291_v5  ;;  %v256_v33 = vld [vmem:[%s725_s22 + $0x58] sm:$0xff]  ;;  %v250_v35 = vld [vmem:[%s725_s22 + $0x28] sm:$0xff]  ;;  %v257_v36 = vld [vmem:[%s725_s22 + $0x60] sm:$0xff]  ;;  %v278_v38 = vpack.c.bf16 %v248_v31, %v247_v30 }
  0x18   : > { %574 = vmatprep.subr.bf16.mxu0 %v290_v8  ;;  %604 = vmatprep.subr.bf16.mxu1 %v290_v8  ;;  %v258_v37 = vld [vmem:[%s725_s22 + $0x68] sm:$0xff]  ;;  %v282_v39 = vpack.c.bf16 %v256_v33, %v255_v32  ;;  %v279_v40 = vpack.c.bf16 %v250_v35, %v249_v34  ;;  %v251_v42 = vld [vmem:[%s725_s22 + $0x30] sm:$0xff]  ;;  %v252_v43 = vld [vmem:[%s725_s22 + $0x38] sm:$0xff] }
  0x19   : > { %v283_v41 = vpack.c.bf16 %v258_v37, %v257_v36  ;;  %v259_v44 = vld [vmem:[%s725_s22 + $0x70] sm:$0xff]  ;;  %v260_v45 = vld [vmem:[%s725_s22 + $0x78] sm:$0xff]  ;;  %v280_v46 = vpack.c.bf16 %v252_v43, %v251_v42 }
  0x1a   : > { %v284_v47 = vpack.c.bf16 %v260_v45, %v259_v44 }
  0x1b   : > { %575 = vmatpush3.bf16.msra.mxu0 %v290_v8  ;;  %612 = vmatpush3.bf16.msra.mxu1 %v290_v8 }
  0x1c   : > { %576 = vmatprep.subr.bf16.mxu0 %v289_v17  ;;  %605 = vmatprep.subr.bf16.mxu1 %v289_v17 }
  0x1f   : > { %577 = vmatpush3.bf16.msra.mxu0 %v289_v17  ;;  %613 = vmatpush3.bf16.msra.mxu1 %v289_v17 }
  0x20   : > { %578 = vmatprep.subr.bf16.mxu0 %v288_v20  ;;  %606 = vmatprep.subr.bf16.mxu1 %v288_v20 }
  0x23   : > { %579 = vmatpush3.bf16.msra.mxu0 %v288_v20  ;;  %614 = vmatpush3.bf16.msra.mxu1 %v288_v20 }
  0x24   : > { %580 = vmatprep.subr.bf16.mxu0 %v287_v23  ;;  %607 = vmatprep.subr.bf16.mxu1 %v287_v23 }
  0x27   : > { %581 = vmatpush3.bf16.msra.mxu0 %v287_v23  ;;  %615 = vmatpush3.bf16.msra.mxu1 %v287_v23 }
  0x28   : > { %582 = vmatprep.subr.bf16.mxu0 %v286_v26  ;;  %608 = vmatprep.subr.bf16.mxu1 %v286_v26 }
  0x2b   : > { %583 = vmatpush3.bf16.msra.mxu0 %v286_v26  ;;  %616 = vmatpush3.bf16.msra.mxu1 %v286_v26 }
  0x2c   : > { %584 = vmatprep.subr.bf16.mxu0 %v285_v29  ;;  %609 = vmatprep.subr.bf16.mxu1 %v285_v29 }
  0x2f   : > { %585 = vmatpush3.bf16.msra.mxu0 %v285_v29  ;;  %617 = vmatpush3.bf16.msra.mxu1 %v285_v29 }
  0x32   : > { %587 = vmatmul.mubr.bf16.vlgmr.msra.gmra.mxu0 %v278_v38  ;;  %595 = vmatmul.mubr.bf16.vlgmr.msra.gmra.mxu1 %v282_v39 }
  0x33   : > { %590 = vmatprep.mubr.bf16.mxu0 %v279_v40  ;;  %598 = vmatprep.mubr.bf16.mxu1 %v283_v41 }
  0x3a   : > { %591 = vmatmul.mubr.bf16.gmra.mxu0 %v280_v46  ;;  %599 = vmatmul.mubr.bf16.gmra.mxu1 %v284_v47 }
  0xf2   : > { %v588_v49 = vpop.f32.mrf.mxu0  ;;  %v596_v50 = vpop.f32.mrf.mxu1 }
  0xf3   : > { %v343_v51 = vadd.f32 %v588_v49, %v548_v48  ;;  %v375_v52 = vadd.f32 %v596_v50, %v548_v48 }
  0xf4   : > { %v334_v53 = vpop.f32.mrf.mxu0  ;;  %v366_v54 = vpop.f32.mrf.mxu1 }
  0xf5   : > { %v399_v55 = vmax.f32 %v343_v51, 0.0  ;;  %v407_v56 = vmax.f32 %v375_v52, 0.0  ;;  %v335_v57 = vadd.f32 %v548_v48, %v334_v53  ;;  %v367_v58 = vadd.f32 %v548_v48, %v366_v54 }
  0xf6   : > { %v589_v59 = vpop.f32.mrf.mxu0  ;;  %v597_v60 = vpop.f32.mrf.mxu1 }
  0xf7   : > { %415 = vst [vmem:[%s761_s28 + $0x10] sm:$0xff] %v399_v55  ;;  %423 = vst [vmem:[%s761_s28 + $0x50] sm:$0xff] %v407_v56  ;;  %v397_v61 = vmax.f32 %v335_v57, 0.0  ;;  %v405_v62 = vmax.f32 %v367_v58, 0.0  ;;  %v346_v63 = vadd.f32 %v589_v59, %v548_v48  ;;  %v378_v0 = vadd.f32 %v597_v60, %v548_v48 }
  0xf8   : > { %v337_v1 = vpop.f32.mrf.mxu0  ;;  %v369_v2 = vpop.f32.mrf.mxu1 }
  0xf9   : > { %413 = vst [vmem:[%s761_s28] sm:$0xff] %v397_v61  ;;  %421 = vst [vmem:[%s761_s28 + $0x40] sm:$0xff] %v405_v62  ;;  %v400_v3 = vmax.f32 %v346_v63, 0.0  ;;  %v408_v4 = vmax.f32 %v378_v0, 0.0  ;;  %v338_v5 = vadd.f32 %v548_v48, %v337_v1  ;;  %v370_v6 = vadd.f32 %v548_v48, %v369_v2 }
  0xfa   : > { %v592_v7 = vpop.f32.mrf.mxu0  ;;  %v600_v8 = vpop.f32.mrf.mxu1 }
  0xfb   : > { %416 = vst [vmem:[%s761_s28 + $0x18] sm:$0xff] %v400_v3  ;;  %424 = vst [vmem:[%s761_s28 + $0x58] sm:$0xff] %v408_v4  ;;  %v398_v9 = vmax.f32 %v338_v5, 0.0  ;;  %v406_v10 = vmax.f32 %v370_v6, 0.0  ;;  %v359_v11 = vadd.f32 %v592_v7, %v548_v48  ;;  %v391_v12 = vadd.f32 %v600_v8, %v548_v48 }
  0xfc   : > { %v350_v13 = vpop.f32.mrf.mxu0  ;;  %v382_v14 = vpop.f32.mrf.mxu1 }
  0xfd   : > { %414 = vst [vmem:[%s761_s28 + $0x8] sm:$0xff] %v398_v9  ;;  %422 = vst [vmem:[%s761_s28 + $0x48] sm:$0xff] %v406_v10  ;;  %v403_v15 = vmax.f32 %v359_v11, 0.0  ;;  %v411_v16 = vmax.f32 %v391_v12, 0.0  ;;  %v351_v17 = vadd.f32 %v548_v48, %v350_v13  ;;  %v383_v18 = vadd.f32 %v548_v48, %v382_v14 }
  0xfe   : > { %v593_v19 = vpop.f32.mrf.mxu0  ;;  %v601_v20 = vpop.f32.mrf.mxu1 }
  0xff   : > { %419 = vst [vmem:[%s761_s28 + $0x30] sm:$0xff] %v403_v15  ;;  %427 = vst [vmem:[%s761_s28 + $0x70] sm:$0xff] %v411_v16  ;;  %v401_v21 = vmax.f32 %v351_v17, 0.0  ;;  %v409_v22 = vmax.f32 %v383_v18, 0.0  ;;  %v362_v23 = vadd.f32 %v593_v19, %v548_v48  ;;  %v394_v24 = vadd.f32 %v601_v20, %v548_v48 }
 0x100   : > { %v353_v25 = vpop.f32.mrf.mxu0  ;;  %v385_v26 = vpop.f32.mrf.mxu1 }
 0x101   : > { %417 = vst [vmem:[%s761_s28 + $0x20] sm:$0xff] %v401_v21  ;;  %425 = vst [vmem:[%s761_s28 + $0x60] sm:$0xff] %v409_v22  ;;  %v404_v27 = vmax.f32 %v362_v23, 0.0  ;;  %v412_v28 = vmax.f32 %v394_v24, 0.0  ;;  %v354_v29 = vadd.f32 %v548_v48, %v353_v25  ;;  %v386_v30 = vadd.f32 %v548_v48, %v385_v26 }
 0x103   : > { %420 = vst [vmem:[%s761_s28 + $0x38] sm:$0xff] %v404_v27  ;;  %428 = vst [vmem:[%s761_s28 + $0x78] sm:$0xff] %v412_v28  ;;  %v402_v31 = vmax.f32 %v354_v29, 0.0  ;;  %v410_v32 = vmax.f32 %v386_v30, 0.0 }
 0x105   : > { %418 = vst [vmem:[%s761_s28 + $0x28] sm:$0xff] %v402_v31  ;;  %426 = vst [vmem:[%s761_s28 + $0x68] sm:$0xff] %v410_v32 }
 0x106 PF: > { %s13_s14 = sadd.s32 1, %s664_s14   ;;  %s792_s12 = smov %s660_s13 }
 0x107   : > { %p10_p5 = scmp.ge.s32.totalorder %s13_s14, 4   ;;  %s793_s13 = smov %s795_s15 }
 0x109   :  { %12 = sbr.rel (!%p10_p5) target bundleno = 2 (0x2), region = 68 }

// kernel: _forward_eval.6
= control target key start
LH: loop header
LB: loop body
LE: loop exit
PB: predicated region body
PF: predicated region fallthrough
CT: control target
= control target key end

     0   :  { %s516_s12 = smov 0   ;;  %s518_s13 = smov 0   ;;  %s578_s0 = inlined_call_operand.vmem [shape: f32[2,8,128], index: 0, kind: input, shape index: {}]   ;;  %s579_s1 = inlined_call_operand.vmem [shape: f32[2,128,128], index: 1, kind: input, shape index: {}]   ;;  %s580_s2 = inlined_call_operand.vmem [shape: f32[2,1,128], index: 2, kind: input, shape index: {}]   ;;  %s581_s3 = inlined_call_operand.vmem [shape: f32[2,8,128], index: 3, kind: output, shape index: {}]  }
   0x1   :  { %s520_s14 = smov 0  }
   0x2 LB: > { %s25_s15 = sadd.s32 1, %s488_s13  ;;  %p406_p0 = scmp.ge.s32.totalorder %s492_s14, 1  ;;  %s492_s14 = sphi %s520_s14, %s13_s14   ;;  %s488_s13 = sphi %s518_s13, %s583_s13   ;;  %s484_s12 = sphi %s516_s12, %s582_s12  }
   0x3   : > { %p27_p1 = scmp.ge.s32.totalorder %s25_s15, 2  ;;  %p173_p2 = scmp.lt.s32.totalorder %s492_s14, 3 }
   0x5   : > { %s585_s15 = smov (%p27_p1, %s25_s15), 0  ;;  %p174_p3 = pnand %p406_p0, %p173_p2 }
   0x6   : > { %p209_p4 = scmp.lt.s32.totalorder (!%p174_p3), %s484_s12, 1 }
   0x7   : > { %177 = sbr.rel (%p174_p3) target bundleno = 248 (0xf8), region = 32 }
   0xc   : > { %v494_v0 = vmov 0.0   ;;  %vm495_vm0 = vmmov 0   ;;  %s587_s12 = smov (!%p209_p4, %s484_s12), 1 }
   0xd   : > { %424 = vmatprep.subr.bf16.mxu0 %v494_v0  ;;  %440 = vmatprep.mubr.msk.bf16.mxu0 %vm495_vm0, %v494_v0  ;;  %s414_s16 = sshll.u32 %s587_s12, 7  ;;  %s407_s20 = sshll.u32 %s587_s12, 3 }
   0xe   : > { %s540_s19 = scalar_lea.vmem %s579_s1, %s414_s16  ;;  %s215_s23 = scalar_lea.vmem %s578_s0, %s407_s20 }
   0xf   : > { %v247_v1 = vld [vmem:[%s540_s19 + $0x70] sm:$0xff]  ;;  %v248_v2 = vld [vmem:[%s540_s19 + $0x78] sm:$0xff]  ;;  %v245_v3 = vld [vmem:[%s540_s19 + $0x60] sm:$0xff]  ;;  %s223_s26 = scalar_lea.vmem %s580_s2, %s587_s12  ;;  %s230_s29 = scalar_lea.vmem %s581_s3, %s407_s20 }
  0x10   : > { %v257_v4 = vpack.c.bf16 %v248_v2, %v247_v1  ;;  %v246_v5 = vld [vmem:[%s540_s19 + $0x68] sm:$0xff]  ;;  %v243_v7 = vld [vmem:[%s540_s19 + $0x50] sm:$0xff]  ;;  %v244_v8 = vld [vmem:[%s540_s19 + $0x58] sm:$0xff] }
  0x11   : > { %v256_v6 = vpack.c.bf16 %v246_v5, %v245_v3  ;;  %v255_v9 = vpack.c.bf16 %v244_v8, %v243_v7  ;;  %v241_v10 = vld [vmem:[%s540_s19 + $0x40] sm:$0xff]  ;;  %v242_v11 = vld [vmem:[%s540_s19 + $0x48] sm:$0xff]  ;;  %v239_v13 = vld [vmem:[%s540_s19 + $0x30] sm:$0xff] }
  0x12   : > { %425 = vmatpush3.bf16.msra.mxu0 %v257_v4  ;;  %v254_v12 = vpack.c.bf16 %v242_v11, %v241_v10  ;;  %v240_v14 = vld [vmem:[%s540_s19 + $0x38] sm:$0xff]  ;;  %v237_v16 = vld [vmem:[%s540_s19 + $0x20] sm:$0xff]  ;;  %v238_v17 = vld [vmem:[%s540_s19 + $0x28] sm:$0xff] }
  0x13   : > { %426 = vmatprep.subr.bf16.mxu0 %v494_v0  ;;  %v253_v15 = vpack.c.bf16 %v240_v14, %v239_v13  ;;  %v252_v18 = vpack.c.bf16 %v238_v17, %v237_v16  ;;  %v235_v19 = vld [vmem:[%s540_s19 + $0x10] sm:$0xff]  ;;  %v236_v20 = vld [vmem:[%s540_s19 + $0x18] sm:$0xff]  ;;  %v233_v22 = vld [vmem:[%s540_s19] sm:$0xff] }
  0x14   : > { %v251_v21 = vpack.c.bf16 %v236_v20, %v235_v19  ;;  %v234_v23 = vld [vmem:[%s540_s19 + $0x8] sm:$0xff]  ;;  %v232_v25 = vld [vmem:[%s215_s23] sm:$0xff] }
  0x15   : > { %v250_v24 = vpack.c.bf16 %v234_v23, %v233_v22  ;;  %v249_v26 = vpack.c.bf16 %v232_v25, %v232_v25  ;;  %v411_v27 = vld [vmem:[%s223_s26] ss:$0 sm:$0xff] }
  0x16   : > { %427 = vmatpush3.bf16.msra.mxu0 %v256_v6 }
  0x17   : > { %428 = vmatprep.subr.bf16.mxu0 %v494_v0 }
  0x1a   : > { %429 = vmatpush3.bf16.msra.mxu0 %v255_v9 }
  0x1b   : > { %430 = vmatprep.subr.bf16.mxu0 %v494_v0 }
  0x1e   : > { %431 = vmatpush3.bf16.msra.mxu0 %v254_v12 }
  0x1f   : > { %432 = vmatprep.subr.bf16.mxu0 %v494_v0 }
  0x22   : > { %433 = vmatpush3.bf16.msra.mxu0 %v253_v15 }
  0x23   : > { %434 = vmatprep.subr.bf16.mxu0 %v494_v0 }
  0x26   : > { %435 = vmatpush3.bf16.msra.mxu0 %v252_v18 }
  0x27   : > { %436 = vmatprep.subr.bf16.mxu0 %v494_v0 }
  0x2a   : > { %437 = vmatpush3.bf16.msra.mxu0 %v251_v21 }
  0x2b   : > { %438 = vmatprep.subr.bf16.mxu0 %v494_v0 }
  0x2e   : > { %439 = vmatpush3.bf16.msra.mxu0 %v250_v24 }
  0x31   : > { %441 = vmatmul.mubr.bf16.vlgmr.msra.gmra.mxu0 %v249_v26 }
  0xf1   : > { %v299_v28 = vpop.f32.mrf.mxu0 }
  0xf2   : > { %v300_v29 = vadd.f32 %v411_v27, %v299_v28 }
  0xf3   : > { %v442_v30 = vpop.f32.mrf.mxu0 }
  0xf4   : > { %v305_v31 = vmax.f32 %v300_v29, 0.0 }
  0xf5   : > { %v302_v32 = vpop.f32.mrf.mxu0 }
  0xf6   : > { %306 = vst [vmem:[%s230_s29] sm:$0xff] %v305_v31 }
  0xf7   : > { %v443_v33 = vpop.f32.mrf.mxu0 }
  0xf8 PF: > { %s13_s14 = sadd.s32 1, %s492_s14   ;;  %s582_s12 = smov %s488_s13 }
  0xf9   : > { %p10_p5 = scmp.ge.s32.totalorder %s13_s14, 4   ;;  %s583_s13 = smov %s585_s15 }
  0xfb   :  { %12 = sbr.rel (!%p10_p5) target bundleno = 2 (0x2), region = 68 }

// kernel: _forward_eval.7
= control target key start
LH: loop header
LB: loop body
LE: loop exit
PB: predicated region body
PF: predicated region fallthrough
CT: control target
= control target key end

     0   :  { %s1247_s30 = smov 0   ;;  %s1568_s0 = inlined_call_operand.vmem [shape: f32[2,64,128], index: 0, kind: input, shape index: {}]   ;;  %s1569_s1 = inlined_call_operand.vmem [shape: f32[2,64,128], index: 1, kind: input, shape index: {}]   ;;  %s1570_s2 = inlined_call_operand.vmem [shape: f32[64,256], index: 2, kind: input, shape index: {}]   ;;  %s1571_s3 = inlined_call_operand.vmem [shape: f32[2,16,128], index: 3, kind: input, shape index: {}]   ;;  %s1572_s4 = inlined_call_operand.vmem [shape: f32[2,16,128], index: 4, kind: input, shape index: {}]   ;;  %s1573_s5 = inlined_call_operand.vmem [shape: f32[16,256], index: 5, kind: input, shape index: {}]   ;;  %s1574_s6 = inlined_call_operand.vmem [shape: f32[2,4,128], index: 6, kind: input, shape index: {}]   ;;  %s1575_s7 = inlined_call_operand.vmem [shape: f32[2,4,128], index: 7, kind: input, shape index: {}]   ;;  %s1576_s8 = inlined_call_operand.vmem [shape: f32[4,256], index: 8, kind: input, shape index: {}]   ;;  %s1577_s9 = inlined_call_operand.vmem [shape: f32[2,1,256], index: 9, kind: output, shape index: {}]  }
   0x1 LB: > { %s1106_s10 = sadd.s32 4294967295, %s1193_s30   ;;  %p1110_p0 = scmp.ge.s32.totalorder %s1193_s30, 1  ;;  %s1193_s30 = sphi %s1247_s30, %s19_s30  }
   0x2   : > { %p335_p1 = scmp.lt.s32.totalorder %s1193_s30, 3 }
   0x4   : > { %p336_p2 = pnand %p1110_p0, %p335_p1 }
   0x5   : > { %p393_p3 = scmp.lt.s32.totalorder (!%p336_p2), %s1106_s10, 1 }
   0x6   : > { %339 = sbr.rel (%p336_p2) target bundleno = 436 (0x1b4), region = 56 }
   0xb   : > { %s1579_s10 = smov (!%p393_p3, %s1106_s10), 1  ;;  %vm878_vm0 = vcmask 1043456   ;;  %v764_v58 = vld [vmem:[%s1573_s5 + $0x8] sm:$0xff]  ;;  %v766_v59 = vld [vmem:[%s1573_s5 + $0x18] sm:$0xff]  ;;  %v763_v63 = vld [vmem:[%s1573_s5] sm:$0xff]  ;;  %vm920_vm1 = vcmask 1041408  }
   0xc   : > { %s1128_s11 = sshll.u32 %s1579_s10, 6  ;;  %s1130_s12 = sshll.u32 %s1579_s10, 4  ;;  %v813_v60 = vpack.c.bf16 %v766_v59, %v764_v58  ;;  %v455_v61 = vld [vmem:[%s1570_s2 + $0x68] sm:$0xff]  ;;  %v457_v62 = vld [vmem:[%s1570_s2 + $0x78] sm:$0xff]  ;;  %vm669_vm2 = vcmask 130112   ;;  %vm676_vm3 = vcmask 195712  }
   0xd   : > { %s1262_s15 = scalar_lea.vmem %s1569_s1, %s1128_s11  ;;  %s1267_s18 = scalar_lea.vmem %s1568_s0, %s1128_s11  ;;  %vm827_vm4 = vcmask 130048   ;;  %vm683_vm5 = vcmask 261312   ;;  %vm690_vm6 = vcmask 326912   ;;  %vm697_vm7 = vcmask 392512  }
   0xe   : > { %v1270_v0 = vld [vmem:[%s1262_s15] sm:$0xff]  ;;  %v1276_v2 = vld [vmem:[%s1262_s15 + $0x8] sm:$0xff]  ;;  %s407_s21 = scalar_lea.vmem %s1571_s3, %s1130_s12  ;;  %s412_s24 = scalar_lea.vmem %s1572_s4, %s1130_s12  ;;  %v429_v16 = vld [vmem:[%s1267_s18 + $0x18] sm:$0xff]  ;;  %845 = vmatprep.subr.bf16.mxu1 %v813_v60  ;;  %vm704_vm8 = vcmask 458112   ;;  %vm711_vm9 = vcmask 523712   ;;  %vm714_vm10 = vcmask 523264  }
   0xf   : > { %v1273_v1 = vld [vmem:[%s1267_s18] sm:$0xff]  ;;  %v482_v3 = vmul.f32 %v1270_v0, %v1270_v0  ;;  %v1283_v5 = vld [vmem:[%s1267_s18 + $0x8] sm:$0xff]  ;;  %v483_v6 = vmul.f32 %v1276_v2, %v1276_v2  ;;  %v428_v17 = vld [vmem:[%s1267_s18 + $0x10] sm:$0xff]  ;;  %v461_v18 = vmul.f32 %v429_v16, %v429_v16  ;;  %s1119_s25 = sshll.u32 %s1579_s10, 2  ;;  %vm916_vm11 = vcmask 31744   ;;  %s1121_s17 = sshll.u32 %s1579_s10, 1 }
  0x10   : > { %v458_v4 = vmul.f32 %v1273_v1, %v1273_v1  ;;  %v459_v7 = vmul.f32 %v1283_v5, %v1283_v5  ;;  %v1292_v8 = vld [vmem:[%s407_s21 + $0x8] sm:$0xff]  ;;  %v1294_v9 = vld [vmem:[%s407_s21] sm:$0xff]  ;;  %v460_v19 = vmul.f32 %v428_v17, %v428_v17  ;;  %v437_v20 = vld [vmem:[%s1262_s15 + $0x18] sm:$0xff]  ;;  %s420_s28 = scalar_lea.vmem %s1575_s7, %s1119_s25  ;;  %s416_s12 = scalar_lea.vmem %s1574_s6, %s1119_s25  ;;  %v507_v46 = vmul.f32 %v1276_v2, %v1283_v5 }
  0x11   : > { %490 = vadd.xlane.f32.xlu1 %v482_v3  ;;  %v768_v10 = vmul.f32 %v1292_v8, %v1292_v8  ;;  %v767_v11 = vmul.f32 %v1294_v9, %v1294_v9  ;;  %v762_v12 = vld [vmem:[%s412_s24 + $0x8] sm:$0xff]  ;;  %v761_v13 = vld [vmem:[%s412_s24] sm:$0xff]  ;;  %v436_v21 = vld [vmem:[%s1262_s15 + $0x10] sm:$0xff]  ;;  %v485_v22 = vmul.f32 %v437_v20, %v437_v20  ;;  %v506_v47 = vmul.f32 %v1270_v0, %v1273_v1  ;;  %s424_s20 = scalar_lea.vmem %s1577_s9, %s1121_s17 }
  0x12   : > { %466 = vadd.xlane.f32.xlu0 %v458_v4  ;;  %v774_v14 = vmul.f32 %v762_v12, %v762_v12  ;;  %v773_v15 = vmul.f32 %v761_v13, %v761_v13  ;;  %v484_v23 = vmul.f32 %v436_v21, %v436_v21  ;;  %v431_v24 = vld [vmem:[%s1267_s18 + $0x28] sm:$0xff]  ;;  %v430_v25 = vld [vmem:[%s1267_s18 + $0x20] sm:$0xff]  ;;  %v433_v32 = vld [vmem:[%s1267_s18 + $0x38] sm:$0xff]  ;;  %v780_v48 = vmul.f32 %v762_v12, %v1292_v8 }
  0x13   : > { %v463_v26 = vmul.f32 %v431_v24, %v431_v24  ;;  %v462_v27 = vmul.f32 %v430_v25, %v430_v25  ;;  %v439_v28 = vld [vmem:[%s1262_s15 + $0x28] sm:$0xff]  ;;  %v438_v29 = vld [vmem:[%s1262_s15 + $0x20] sm:$0xff]  ;;  %v432_v33 = vld [vmem:[%s1267_s18 + $0x30] sm:$0xff]  ;;  %v465_v34 = vmul.f32 %v433_v32, %v433_v32  ;;  %v779_v49 = vmul.f32 %v761_v13, %v1294_v9 }
  0x14   : > { %v487_v30 = vmul.f32 %v439_v28, %v439_v28  ;;  %v486_v31 = vmul.f32 %v438_v29, %v438_v29  ;;  %v464_v35 = vmul.f32 %v432_v33, %v432_v33  ;;  %v441_v36 = vld [vmem:[%s1262_s15 + $0x38] sm:$0xff]  ;;  %v440_v37 = vld [vmem:[%s1262_s15 + $0x30] sm:$0xff]  ;;  %v875_v38 = vld [vmem:[%s420_s28] sm:$0xf]  ;;  %v509_v50 = vmul.f32 %v437_v20, %v429_v16 }
  0x15   : > { %492 = vadd.xlane.f32.xlu1 %v483_v6  ;;  %v874_v39 = vld [vmem:[%s416_s12] sm:$0xf]  ;;  %v489_v40 = vmul.f32 %v441_v36, %v441_v36  ;;  %v488_v41 = vmul.f32 %v440_v37, %v440_v37  ;;  %v882_v42 = vmul.f32 %v875_v38, %v875_v38  ;;  %v508_v51 = vmul.f32 %v436_v21, %v428_v17  ;;  %v765_v1 = vld [vmem:[%s1573_s5 + $0x10] sm:$0xff]  ;;  %v451_v6 = vld [vmem:[%s1570_s2 + $0x48] sm:$0xff] }
  0x16   : > { %468 = vadd.xlane.f32.xlu0 %v459_v7  ;;  %v877_v43 = vmul.f32 %v874_v39, %v874_v39  ;;  %v511_v52 = vmul.f32 %v439_v28, %v431_v24  ;;  %v510_v53 = vmul.f32 %v438_v29, %v430_v25  ;;  %v513_v54 = vmul.f32 %v441_v36, %v433_v32  ;;  %v454_v2 = vld [vmem:[%s1570_s2 + $0x60] sm:$0xff]  ;;  %v456_v3 = vld [vmem:[%s1570_s2 + $0x70] sm:$0xff]  ;;  %v453_v7 = vld [vmem:[%s1570_s2 + $0x58] sm:$0xff] }
  0x17   : > { %v883_v44 = vsel %vm878_vm0, %v882_v42, 0.0  ;;  %v512_v55 = vmul.f32 %v440_v37, %v432_v33  ;;  %v886_v56 = vmul.f32 %v875_v38, %v874_v39  ;;  %v645_v0 = vpack.c.bf16 %v457_v62, %v455_v61  ;;  %v447_v13 = vld [vmem:[%s1570_s2 + $0x28] sm:$0xff]  ;;  %v446_v16 = vld [vmem:[%s1570_s2 + $0x20] sm:$0xff]  ;;  %v448_v17 = vld [vmem:[%s1570_s2 + $0x30] sm:$0xff] }
  0x18   : > { %v879_v45 = vsel %vm878_vm0, %v877_v43, 0.0  ;;  %v812_v4 = vpack.c.bf16 %v765_v1, %v763_v63  ;;  %v644_v5 = vpack.c.bf16 %v456_v3, %v454_v2  ;;  %v1195_v8 = vmov 0   ;;  %v443_v20 = vld [vmem:[%s1570_s2 + $0x8] sm:$0xff]  ;;  %v445_v21 = vld [vmem:[%s1570_s2 + $0x18] sm:$0xff]  ;;  %v442_v25 = vld [vmem:[%s1570_s2] sm:$0xff] }
  0x19   : > { %771 = vadd.xlane.f32.xlu1 %v768_v10  ;;  %v887_v57 = vsel %vm878_vm0, %v886_v56, 0.0  ;;  %726 = vmatprep.subr.bf16.mxu0 %v645_v0  ;;  %v643_v9 = vpack.c.bf16 %v453_v7, %v451_v6  ;;  %v450_v10 = vld [vmem:[%s1570_s2 + $0x40] sm:$0xff]  ;;  %v639_v24 = vpack.c.bf16 %v445_v21, %v443_v20 }
  0x1a   : > { %769 = vadd.xlane.f32.xlu0 %v767_v11  ;;  %846 = vmatpush1.bf16.msra.mxu1 %v812_v4  ;;  %v452_v11 = vld [vmem:[%s1570_s2 + $0x50] sm:$0xff] }
  0x1b   : > { %727 = vmatpush1.bf16.msra.mxu0 %v644_v5  ;;  %863 = vmatprep.mubr.bf16.mxu1 %v1195_v8  ;;  %v642_v12 = vpack.c.bf16 %v452_v11, %v450_v10 }
  0x1c   : > { %750 = vmatprep.mubr.bf16.mxu0 %v1195_v8  ;;  %728 = vmatprep.subr.bf16.mxu0 %v643_v9 }
  0x1d   : > { %777 = vadd.xlane.f32.xlu1 %v774_v14  ;;  %v449_v14 = vld [vmem:[%s1570_s2 + $0x38] sm:$0xff] }
  0x1e   : > { %775 = vadd.xlane.f32.xlu0 %v773_v15  ;;  %v641_v15 = vpack.c.bf16 %v449_v14, %v447_v13 }
  0x1f   : > { %729 = vmatpush1.bf16.msra.mxu0 %v642_v12 }
  0x20   : > { %730 = vmatprep.subr.bf16.mxu0 %v641_v15 }
  0x21   : > { %472 = vadd.xlane.f32.xlu1 %v461_v18  ;;  %v640_v18 = vpack.c.bf16 %v448_v17, %v446_v16 }
  0x22   : > { %470 = vadd.xlane.f32.xlu0 %v460_v19  ;;  %v876_v19 = vld [vmem:[%s1576_s8] sm:$0xff] }
  0x23   : > { %731 = vmatpush1.bf16.msra.mxu0 %v640_v18 }
  0x24   : > { %732 = vmatprep.subr.bf16.mxu0 %v639_v24 }
  0x25   : > { %496 = vadd.xlane.f32.xlu1 %v485_v22  ;;  %v905_v22 = vcombine.high %v876_v19, %v876_v19 }
  0x26   : > { %494 = vadd.xlane.f32.xlu0 %v484_v23  ;;  %v907_v23 = vpack.c.bf16 %v876_v19, %v876_v19 }
  0x27   : > { %v908_v28 = vpack.c.bf16 %v905_v22, %v905_v22 }
  0x28   : > { %v1396_v29 = vsel %vm920_vm1, %v907_v23, 0 }
  0x29   : > { %476 = vadd.xlane.f32.xlu1 %v463_v26  ;;  %v444_v26 = vld [vmem:[%s1570_s2 + $0x10] sm:$0xff]  ;;  %1124 = vmatprep.subr.msk.bf16.mxu1 %vm920_vm1, %v908_v28 }
  0x2a   : > { %474 = vadd.xlane.f32.xlu0 %v462_v27  ;;  %v638_v27 = vpack.c.bf16 %v444_v26, %v442_v25 }
  0x2c   : > { %733 = vmatpush1.bf16.msra.mxu0 %v638_v27 }
  0x2d   : > { %500 = vadd.xlane.f32.xlu1 %v487_v30 }
  0x2e   : > { %498 = vadd.xlane.f32.xlu0 %v486_v31 }
  0x31   : > { %480 = vadd.xlane.f32.xlu1 %v465_v34 }
  0x32   : > { %478 = vadd.xlane.f32.xlu0 %v464_v35 }
  0x35   : > { %504 = vadd.xlane.f32.xlu1 %v489_v40 }
  0x36   : > { %502 = vadd.xlane.f32.xlu0 %v488_v41 }
  0x39   : > { %884 = vadd.xlane.f32.xlu1 %v883_v44 }
  0x3a   : > { %880 = vadd.xlane.f32.xlu0 %v879_v45 }
  0x3d   : > { %516 = vadd.xlane.f32.xlu1 %v507_v46 }
  0x3e   : > { %514 = vadd.xlane.f32.xlu0 %v506_v47 }
  0x41   : > { %783 = vadd.xlane.f32.xlu1 %v780_v48 }
  0x42   : > { %781 = vadd.xlane.f32.xlu0 %v779_v49 }
  0x45   : > { %520 = vadd.xlane.f32.xlu1 %v509_v50  ;;  %v658_v50 = vlaneseq }
  0x46   : > { %518 = vadd.xlane.f32.xlu0 %v508_v51 }
  0x47   : > { %v1430_v63 = vshrl.u32 %v658_v50, 7  ;;  %vm990_vm12 = vcmp.lt.s32.totalorder %v658_v50, 256 }
  0x49   : > { %524 = vadd.xlane.f32.xlu1 %v511_v52 }
  0x4a   : > { %522 = vadd.xlane.f32.xlu0 %v510_v53 }
  0x4d   : > { %528 = vadd.xlane.f32.xlu1 %v513_v54 }
  0x4e   : > { %526 = vadd.xlane.f32.xlu0 %v512_v55  ;;  %v659_v55 = vand.u32 127, %v658_v50 }
  0x50   : > { %v664_v2 = vadd.s32 4294967288, %v659_v55  ;;  %v1435_v3 = vadd.s32 4294967280, %v659_v55  ;;  %v1448_v12 = vadd.s32 4294967272, %v659_v55  ;;  %v1450_v13 = vadd.s32 4294967264, %v659_v55 }
  0x51   : > { %v1455_v16 = vsub.s32 %v659_v55, %v1430_v63  ;;  %v1457_v17 = vadd.s32 4294967256, %v659_v55 }
  0x52   : > { %888 = vadd.xlane.f32.xlu0 %v887_v57  ;;  %v1463_v20 = vsub.s32 %v664_v2, %v1430_v63  ;;  %v674_v21 = vsub.s32 %v1435_v3, %v1430_v63 }
  0x9a   : > { %v491_v30 = vpop.xlane.xlu1 %490 }
  0x9b   : > { %v467_v31 = vpop.xlane.xlu0 %466  ;;  %v546_v34 = vmax.f32 %v491_v30, 1e-24 }
  0x9c   : > { %v530_v35 = vmax.f32 %v467_v31, 1e-24 }
  0x9d   : > { %1143 = vrsqrt.f32 %v546_v34 }
  0x9e   : > { %v493_v32 = vpop.xlane.xlu1 %492  ;;  %1145 = vrsqrt.f32 %v530_v35 }
  0x9f   : > { %v469_v33 = vpop.xlane.xlu0 %468  ;;  %v547_v38 = vmax.f32 %v493_v32, 1e-24 }
  0xa0   : > { %v531_v39 = vmax.f32 %v469_v33, 1e-24 }
  0xa1   : > { %1147 = vrsqrt.f32 %v547_v38 }
  0xa2   : > { %v1398_v36 = vpop.xlane.xlu1 %771  ;;  %1149 = vrsqrt.f32 %v531_v39  ;;  %v695_v39 = vsub.s32 %v1457_v17, %v1430_v63 }
  0xa3   : > { %v1400_v37 = vpop.xlane.xlu0 %769  ;;  %v786_v44 = vmax.f32 %v1398_v36, 1e-24 }
  0xa4   : > { %v785_v45 = vmax.f32 %v1400_v37, 1e-24 }
  0xa6   : > { %v778_v40 = vpop.xlane.xlu1 %777 }
  0xa7   : > { %v776_v41 = vpop.xlane.xlu0 %775  ;;  %v790_v42 = vmax.f32 %v778_v40, 1e-24 }
  0xa8   : > { %v789_v43 = vmax.f32 %v776_v41, 1e-24 }
  0xa9   : > { %1151 = vrsqrt.f32 %v790_v42  ;;  %v1489_v42 = vadd.s32 4294967248, %v659_v55 }
  0xaa   : > { %1153 = vrsqrt.f32 %v789_v43  ;;  %v1404_v46 = vpop.xlane.xlu1 %472  ;;  %v1417_v56 = vpop.eup %1143  ;;  %v1491_v43 = vadd.s32 4294967240, %v659_v55 }
  0xab   : > { %v1406_v47 = vpop.xlane.xlu0 %470  ;;  %v533_v48 = vmax.f32 %v1404_v46, 1e-24  ;;  %1155 = vrsqrt.f32 %v786_v44  ;;  %v1423_v59 = vpop.eup %1145  ;;  %v578_v1 = vmul.f32 %v1417_v56, %v491_v30 }
  0xac   : > { %v532_v49 = vmax.f32 %v1406_v47, 1e-24  ;;  %1157 = vrsqrt.f32 %v785_v45  ;;  %v562_v5 = vmul.f32 %v1423_v59, %v467_v31  ;;  %v681_v31 = vsub.s32 %v1448_v12, %v1430_v63 }
  0xad   : > { %1159 = vrsqrt.f32 %v533_v48  ;;  %v586_v19 = vmul.f32 %v1417_v56, %v578_v1  ;;  %v702_v12 = vsub.s32 %v1489_v42, %v1430_v63 }
  0xae   : > { %v1410_v51 = vpop.xlane.xlu1 %496  ;;  %1161 = vrsqrt.f32 %v532_v49  ;;  %v1427_v62 = vpop.eup %1147  ;;  %v570_v23 = vmul.f32 %v1423_v59, %v562_v5 }
  0xaf   : > { %v1412_v52 = vpop.xlane.xlu0 %494  ;;  %v549_v53 = vmax.f32 %v1410_v51, 1e-24  ;;  %v1432_v0 = vpop.eup %1149  ;;  %v579_v14 = vmul.f32 %v1427_v62, %v493_v32  ;;  %v688_v32 = vsub.s32 %v1450_v13, %v1430_v63 }
  0xb0   : > { %v548_v54 = vmax.f32 %v1412_v52, 1e-24  ;;  %v563_v15 = vmul.f32 %v1432_v0, %v469_v33 }
  0xb1   : > { %1163 = vrsqrt.f32 %v549_v53  ;;  %v587_v34 = vmul.f32 %v1427_v62, %v579_v14  ;;  %v594_v53 = vadd.f32 %v586_v19, %v570_v23 }
  0xb2   : > { %1165 = vrsqrt.f32 %v548_v54  ;;  %v1419_v57 = vpop.xlane.xlu1 %476  ;;  %v571_v35 = vmul.f32 %v1432_v0, %v563_v15  ;;  %v610_v15 = vmul.f32 %v1423_v59, %v1417_v56 }
  0xb3   : > { %v1421_v58 = vpop.xlane.xlu0 %474  ;;  %v535_v60 = vmax.f32 %v1419_v57, 1e-24 }
  0xb4   : > { %v534_v61 = vmax.f32 %v1421_v58, 1e-24 }
  0xb5   : > { %1167 = vrsqrt.f32 %v535_v60 }
  0xb6   : > { %v1437_v4 = vpop.eup %1151  ;;  %1169 = vrsqrt.f32 %v534_v61  ;;  %v1440_v6 = vpop.xlane.xlu1 %500 }
  0xb7   : > { %v1442_v7 = vpop.xlane.xlu0 %498  ;;  %v1444_v9 = vpop.eup %1153  ;;  %v551_v10 = vmax.f32 %v1440_v6, 1e-24  ;;  %v798_v24 = vmul.f32 %v1437_v4, %v778_v40 }
  0xb8   : > { %v550_v11 = vmax.f32 %v1442_v7, 1e-24  ;;  %v1459_v18 = vpop.eup %1155  ;;  %v797_v25 = vmul.f32 %v1444_v9, %v776_v41 }
  0xb9   : > { %1171 = vrsqrt.f32 %v551_v10  ;;  %v1158_v22 = vpop.eup %1157  ;;  %v794_v38 = vmul.f32 %v1459_v18, %v1398_v36  ;;  %v800_v45 = vmul.f32 %v1437_v4, %v798_v24  ;;  %v595_v10 = vadd.f32 %v587_v34, %v571_v35 }
  0xba   : > { %1173 = vrsqrt.f32 %v550_v11  ;;  %v1470_v26 = vpop.xlane.xlu1 %480  ;;  %v1480_v33 = vpop.eup %1159  ;;  %v793_v41 = vmul.f32 %v1158_v22, %v1400_v37  ;;  %v799_v48 = vmul.f32 %v1444_v9, %v797_v25  ;;  %v611_v24 = vmul.f32 %v1432_v0, %v1427_v62 }
  0xbb   : > { %v1472_v27 = vpop.xlane.xlu0 %478  ;;  %v537_v28 = vmax.f32 %v1470_v26, 1e-24  ;;  %v1162_v40 = vpop.eup %1161  ;;  %v565_v37 = vmul.f32 %v1480_v33, %v1404_v46  ;;  %v796_v1 = vmul.f32 %v1459_v18, %v794_v38  ;;  %v603_v35 = vmul.f32 0.5, %v595_v10 }
  0xbc   : > { %v536_v30 = vmax.f32 %v1472_v27, 1e-24  ;;  %v564_v2 = vmul.f32 %v1162_v40, %v1406_v47  ;;  %v795_v11 = vmul.f32 %v1158_v22, %v793_v41  ;;  %v602_v38 = vmul.f32 0.5, %v594_v53 }
  0xbd   : > { %1175 = vrsqrt.f32 %v537_v28  ;;  %v802_v47 = vadd.f32 %v800_v45, %v796_v1  ;;  %v806_v41 = vmul.f32 %v1459_v18, %v1437_v4  ;;  %v805_v62 = vmul.f32 %v1158_v22, %v1444_v9 }
  0xbe   : > { %v1164_v44 = vpop.eup %1163  ;;  %1177 = vrsqrt.f32 %v536_v30  ;;  %v1495_v49 = vpop.xlane.xlu1 %504  ;;  %v801_v34 = vadd.f32 %v799_v48, %v795_v11  ;;  %v572_v56 = vmul.f32 %v1162_v40, %v564_v2 }
  0xbf   : > { %v1497_v36 = vpop.xlane.xlu0 %502  ;;  %v1166_v54 = vpop.eup %1165  ;;  %v581_v60 = vmul.f32 %v1164_v44, %v1410_v51  ;;  %v553_v55 = vmax.f32 %v1495_v49, 1e-24  ;;  %v613_v9 = vmul.f32 %v1164_v44, %v1480_v33 }
  0xc0   : > { %v552_v61 = vmax.f32 %v1497_v36, 1e-24  ;;  %v580_v5 = vmul.f32 %v1166_v54, %v1412_v52  ;;  %v573_v52 = vmul.f32 %v1480_v33, %v565_v37  ;;  %v612_v18 = vmul.f32 %v1166_v54, %v1162_v40 }
  0xc1   : > { %v589_v14 = vmul.f32 %v1164_v44, %v581_v60  ;;  %1179 = vrsqrt.f32 %v553_v55 }
  0xc2   : > { %v1168_v46 = vpop.eup %1167  ;;  %v588_v19 = vmul.f32 %v1166_v54, %v580_v5  ;;  %1181 = vrsqrt.f32 %v552_v61  ;;  %v1509_v51 = vpop.xlane.xlu1 %884  ;;  %v804_v61 = vmul.f32 0.5, %v802_v47  ;;  %v803_v5 = vmul.f32 0.5, %v801_v34 }
  0xc3   : > { %v1511_v23 = vpop.xlane.xlu0 %880  ;;  %v1170_v25 = vpop.eup %1169  ;;  %v892_v28 = vmax.f32 %v1509_v51, 1e-24  ;;  %v567_v59 = vmul.f32 %v1168_v46, %v1419_v57  ;;  %v597_v0 = vadd.f32 %v589_v14, %v573_v52 }
  0xc4   : > { %v890_v30 = vmax.f32 %v1511_v23, 1e-24  ;;  %v566_v37 = vmul.f32 %v1170_v25, %v1421_v58  ;;  %v596_v48 = vadd.f32 %v588_v19, %v572_v56 }
  0xc5   : > { %1183 = vrsqrt.f32 %v892_v28  ;;  %v575_v10 = vmul.f32 %v1168_v46, %v567_v59  ;;  %v605_v14 = vmul.f32 0.5, %v597_v0 }
  0xc6   : > { %v1172_v45 = vpop.eup %1171  ;;  %1185 = vrsqrt.f32 %v890_v30  ;;  %v517_v60 = vpop.xlane.xlu1 %516  ;;  %v574_v47 = vmul.f32 %v1170_v25, %v566_v37  ;;  %v604_v56 = vmul.f32 0.5, %v596_v48 }
  0xc7   : > { %v515_v55 = vpop.xlane.xlu0 %514  ;;  %v1174_v1 = vpop.eup %1173  ;;  %v583_v57 = vmul.f32 %v1172_v45, %v1440_v6  ;;  %v619_v53 = vmul.f32 %v611_v24, %v517_v60  ;;  %v615_v6 = vmul.f32 %v1172_v45, %v1168_v46 }
  0xc8   : > { %v618_v2 = vmul.f32 %v610_v15, %v515_v55  ;;  %v582_v4 = vmul.f32 %v1174_v1, %v1442_v7  ;;  %v614_v54 = vmul.f32 %v1174_v1, %v1170_v25 }
  0xc9   : > { %v591_v22 = vmul.f32 %v1172_v45, %v583_v57  ;;  %v627_v58 = vsub.f32 %v603_v35, %v619_v53 }
  0xca   : > { %v626_v11 = vsub.f32 %v602_v38, %v618_v2  ;;  %v1176_v52 = vpop.eup %1175  ;;  %v590_v19 = vmul.f32 %v1174_v1, %v582_v4  ;;  %v784_v28 = vpop.xlane.xlu1 %783 }
  0xcb   : > { %v782_v30 = vpop.xlane.xlu0 %781  ;;  %v1178_v24 = vpop.eup %1177  ;;  %v569_v15 = vmul.f32 %v1176_v52, %v1470_v26  ;;  %v808_v59 = vmul.f32 %v806_v41, %v784_v28  ;;  %v599_v40 = vadd.f32 %v591_v22, %v575_v10 }
  0xcc   : > { %v634_v34 = vpack.c.bf16 %v627_v58, %v626_v11  ;;  %v807_v7 = vmul.f32 %v805_v62, %v782_v30  ;;  %v568_v33 = vmul.f32 %v1178_v24, %v1472_v27  ;;  %v598_v44 = vadd.f32 %v590_v19, %v574_v47 }
  0xcd   : > { %v577_v35 = vmul.f32 %v1176_v52, %v569_v15  ;;  %v810_v37 = vsub.f32 %v804_v61, %v808_v59  ;;  %v607_v45 = vmul.f32 0.5, %v599_v40 }
  0xce   : > { %v650_v38 = vunpack.c.l.b16 %v634_v34  ;;  %v651_v0 = vunpack.c.h.b16 %v634_v34  ;;  %v1180_v60 = vpop.eup %1179  ;;  %v576_v55 = vmul.f32 %v1178_v24, %v568_v33  ;;  %v809_v57 = vsub.f32 %v803_v5, %v807_v7  ;;  %v521_v48 = vpop.xlane.xlu1 %520 }
  0xcf   : > { %v519_v46 = vpop.xlane.xlu0 %518  ;;  %v606_v53 = vmul.f32 0.5, %v598_v44  ;;  %v1182_v26 = vpop.eup %1181  ;;  %v585_v41 = vmul.f32 %v1180_v60, %v1495_v49  ;;  %v621_v2 = vmul.f32 %v613_v9, %v521_v48  ;;  %v617_v10 = vmul.f32 %v1180_v60, %v1176_v52 }
  0xd0   : > { %v663_v62 = vrot.slane %v650_v38, %v1455_v16  ;;  %v668_v27 = vrot.slane %v651_v0, %v1463_v20  ;;  %v584_v25 = vmul.f32 %v1182_v26, %v1497_v36  ;;  %v811_v61 = vpack.c.bf16 %v810_v37, %v809_v57 }
  0xd1   : > { %v620_v1 = vmul.f32 %v612_v18, %v519_v46  ;;  %v593_v5 = vmul.f32 %v1180_v60, %v585_v41  ;;  %v629_v4 = vsub.f32 %v605_v14, %v621_v2  ;;  %v616_v22 = vmul.f32 %v1182_v26, %v1178_v24 }
  0xd2   : > { %v670_v58 = vsel %vm669_vm2, %v668_v27, %v663_v62  ;;  %v1184_v11 = vpop.eup %1183  ;;  %v592_v47 = vmul.f32 %v1182_v26, %v584_v25  ;;  %v815_v49 = vunpack.c.l.b16 %v811_v61  ;;  %v816_v19 = vunpack.c.h.b16 %v811_v61  ;;  %v525_v30 = vpop.xlane.xlu1 %524 }
  0xd3   : > { %v628_v28 = vsub.f32 %v604_v56, %v620_v1  ;;  %v523_v15 = vpop.xlane.xlu0 %522  ;;  %v1186_v9 = vpop.eup %1185  ;;  %v896_v34 = vmul.f32 %v1184_v11, %v1509_v51  ;;  %v623_v59 = vmul.f32 %v615_v6, %v525_v30  ;;  %v601_v7 = vadd.f32 %v593_v5, %v577_v35 }
  0xd4   : > { %v622_v36 = vmul.f32 %v614_v54, %v523_v15  ;;  %v894_v18 = vmul.f32 %v1186_v9, %v1511_v23  ;;  %v820_v14 = vrot.slane %v815_v49, %v1455_v16  ;;  %v824_v52 = vrot.slane %v816_v19, %v1463_v20 }
  0xd5   : > { %v635_v24 = vpack.c.bf16 %v629_v4, %v628_v28  ;;  %v897_v33 = vmul.f32 %v1184_v11, %v896_v34  ;;  %v631_v40 = vsub.f32 %v607_v45, %v623_v59  ;;  %v609_v38 = vmul.f32 0.5, %v601_v7 }
  0xd6   : > { %v630_v44 = vsub.f32 %v606_v53, %v622_v36  ;;  %v895_v56 = vmul.f32 %v1186_v9, %v894_v18  ;;  %v529_v60 = vpop.xlane.xlu1 %528  ;;  %v600_v57 = vadd.f32 %v592_v47, %v576_v55  ;;  %v825_v23 = vsel %vm669_vm2, %v824_v52, %v820_v14 }
  0xd7   : > { %v652_v0 = vunpack.c.l.b16 %v635_v24  ;;  %v653_v37 = vunpack.c.h.b16 %v635_v24  ;;  %v527_v51 = vpop.xlane.xlu0 %526  ;;  %v625_v54 = vmul.f32 %v617_v10, %v529_v60  ;;  %v826_v45 = vpack.c.b16 %v825_v23, %v825_v23 }
  0xd8   : > { %v636_v6 = vpack.c.bf16 %v631_v40, %v630_v44  ;;  %v624_v35 = vmul.f32 %v616_v22, %v527_v51  ;;  %v608_v46 = vmul.f32 0.5, %v600_v57  ;;  %v898_v55 = vadd.f32 %v897_v33, %v895_v56 }
  0xd9   : > { %v675_v20 = vrot.slane %v652_v0, %v674_v21  ;;  %v682_v48 = vrot.slane %v653_v37, %v681_v31  ;;  %v633_v41 = vsub.f32 %v609_v38, %v625_v54  ;;  %1123 = vmatmul.mubr.msk.bf16.vlgmr.msra.gmra.mxu1 %vm827_vm4, %v826_v45  ;;  %v900_v2 = vmul.f32 %v1186_v9, %v1184_v11 }
  0xda   : > { %v654_v53 = vunpack.c.l.b16 %v636_v6  ;;  %v655_v26 = vunpack.c.h.b16 %v636_v6  ;;  %v632_v62 = vsub.f32 %v608_v46, %v624_v35  ;;  %942 = vmatpush1.bf16.msra.mxu1 %v1396_v29  ;;  %959 = vmatprep.mubr.bf16.mxu1 %v1195_v8  ;;  %v709_v21 = vsub.s32 %v1491_v43, %v1430_v63 }
  0xdb   : > { %v677_v27 = vsel %vm676_vm3, %v675_v20, %v670_v58  ;;  %v889_v25 = vpop.xlane.xlu0 %888  ;;  %v899_v61 = vmul.f32 0.5, %v898_v55  ;;  %v1196_v9 = vmov 1966171168  }
  0xdc   : > { %v689_v3 = vrot.slane %v654_v53, %v688_v32  ;;  %v637_v31 = vpack.c.bf16 %v633_v41, %v632_v62  ;;  %v901_v1 = vmul.f32 %v900_v2, %v889_v25  ;;  %v696_v10 = vrot.slane %v655_v26, %v695_v39 }
  0xdd   : > { %v684_v13 = vsel %vm683_vm5, %v682_v48, %v677_v27  ;;  %v974_v34 = vunpack.c.l.s4 %v1196_v9 }
  0xde   : > { %v656_v32 = vunpack.c.l.b16 %v637_v31  ;;  %v657_v5 = vunpack.c.h.b16 %v637_v31  ;;  %v902_v42 = vsub.f32 %v899_v61, %v901_v1  ;;  %v691_v4 = vsel %vm690_vm6, %v689_v3, %v684_v13 }
  0xdf   : > { %v698_v58 = vsel %vm697_vm7, %v696_v10, %v691_v4  ;;  %v975_v7 = vunpack.c.0.s8 %v974_v34 }
  0xe0   : > { %v703_v29 = vrot.slane %v656_v32, %v702_v12  ;;  %v710_v22 = vrot.slane %v657_v5, %v709_v21  ;;  %v903_v8 = vpack.c.bf16 %v902_v42, %v902_v42 }
  0xe1   : > { %v978_v44 = vsub.s32 %v975_v7, %v1430_v63 }
  0xe2   : > { %v910_v43 = vunpack.c.l.b16 %v903_v8  ;;  %v705_v11 = vsel %vm704_vm8, %v703_v29, %v698_v58 }
  0xe3   : > { %v712_v47 = vsel %vm711_vm9, %v710_v22, %v705_v11 }
  0xe4   : > { %v914_v49 = vrot.slane %v910_v43, %v1455_v16  ;;  %v713_v17 = vpack.c.b16 %v712_v47, %v712_v47 }
  0xe6   : > { %v915_v39 = vpack.c.b16 %v914_v49, %v914_v49  ;;  %1122 = vmatmul.mubr.msk.bf16.vlgmr.msra.gmra.mxu0 %vm714_vm10, %v713_v17 }
  0xe8   : > { %1125 = vmatmul.mubr.msk.bf16.vlgmr.msra.gmra.mxu1 %vm916_vm11, %v915_v39 }
 0x199   : > { %v865_v19 = vpop.f32.mrf.mxu1 }
 0x19b   : > { %v867_v28 = vpop.f32.mrf.mxu1 }
 0x19d   : > { %v869_v30 = vpop.f32.mrf.mxu1 }
 0x19f   : > { %v870_v15 = vpop.f32.mrf.mxu1 }
 0x1a6   : > { %v752_v59 = vpop.f32.mrf.mxu0 }
 0x1a7   : > { %v872_v36 = vmul.f32 %v865_v19, %v752_v59 }
 0x1a8   : > { %v754_v18 = vpop.f32.mrf.mxu0  ;;  %v961_v14 = vpop.f32.mrf.mxu1 }
 0x1a9   : > { %v873_v52 = vmul.f32 %v867_v28, %v754_v18  ;;  %v968_v33 = vmul.f32 %v961_v14, %v872_v36 }
 0x1aa   : > { %v756_v24 = vpop.f32.mrf.mxu0  ;;  %v963_v16 = vpop.f32.mrf.mxu1 }
 0x1ab   : > { %v969_v40 = vmul.f32 %v963_v16, %v873_v52 }
 0x1ac   : > { %v757_v38 = vpop.f32.mrf.mxu0  ;;  %v965_v56 = vpop.f32.mrf.mxu1 }
 0x1ad   : > { %v972_v0 = vcombine.low %v968_v33, %v969_v40 }
 0x1ae   : > { %v966_v37 = vpop.f32.mrf.mxu1 }
 0x1af   : > { %v979_v60 = vrot.slane %v972_v0, %v978_v44 }
 0x1b1   : > { %v986_v57 = vrot.slane %v979_v60, %v978_v44 }
 0x1b3   : > { %992 = vst.msk [vmem:[%s424_s20] sm:$0x3] %vm990_vm12, %v986_v57 }
 0x1b4 PF: > { %s19_s30 = sadd.s32 1, %s1193_s30  }
 0x1b5   : > { %p16_p4 = scmp.ge.s32.totalorder %s19_s30, 4  }
 0x1b7   :  { %18 = sbr.rel (!%p16_p4) target bundleno = 1 (0x1), region = 101 }

</bundles_post_ra>
